<compile_context>
chip_gen: v5e
topology: v5e:2x2
jax: 0.10.0
libtpu: 0.0.40
codegen_flags: <defaults>
</compile_context>

<pallas_src>
import functools

import jax
import jax.numpy as jnp
from jax.experimental import pallas as pl
from jax.experimental.pallas import tpu as pltpu


def _round_up(x, m):
    return ((x + m - 1) // m) * m


# ----------------------------------------------------------------------------
# Single fused kernel (no grid: everything is KB-scale and VMEM-resident).
# PyTorch LSTM gate order: i, f, g, o.  Weights pre-transposed to (in, out).
# ----------------------------------------------------------------------------
def make_fused_kernel(num_layers, seq_len, batch_pad, hidden_dim, vocab):
    S, B, H, V = seq_len, batch_pad, hidden_dim, vocab

    def kernel(*refs):
        x_ref, h0_ref, c0_ref = refs[:3]
        lstm_refs = refs[3:3 + 3 * num_layers]                 # (w_ih_t, w_hh_t, b) per layer
        w1_ref, b1_ref, w2_ref, b2_ref = refs[3 + 3 * num_layers:7 + 3 * num_layers]
        out_ref, hn_ref, cn_ref = refs[7 + 3 * num_layers:10 + 3 * num_layers]
        y_sc = refs[10 + 3 * num_layers]                       # VMEM (S*B, H) scratch

        cur = x_ref[...]                                       # (S*B, I) layer input
        for layer in range(num_layers):
            w_ih = lstm_refs[3 * layer][...]                   # (I, 4H)
            w_hh = lstm_refs[3 * layer + 1][...]               # (H, 4H)
            b = lstm_refs[3 * layer + 2][...]                  # (1, 4H)

            # Input contribution for ALL timesteps in one MXU matmul.
            gx = jnp.dot(cur, w_ih, preferred_element_type=jnp.float32) + b  # (S*B, 4H)

            h = h0_ref[layer]                                  # (B, H)
            c = c0_ref[layer]
            for t in range(S):                                 # static, fully unrolled
                g = gx[t * B:(t + 1) * B, :] + jnp.dot(
                    h, w_hh, preferred_element_type=jnp.float32)             # (B, 4H)
                i_g = jax.nn.sigmoid(g[:, 0 * H:1 * H])
                f_g = jax.nn.sigmoid(g[:, 1 * H:2 * H])
                g_g = jnp.tanh(g[:, 2 * H:3 * H])
                o_g = jax.nn.sigmoid(g[:, 3 * H:4 * H])
                c = f_g * c + i_g * g_g
                h = o_g * jnp.tanh(c)
                y_sc[pl.ds(t * B, B), :] = h
            hn_ref[layer] = h                                  # written once per layer
            cn_ref[layer] = c
            cur = y_sc[...]                                    # (S*B, H): next layer / head input

        # Head: linear1 -> linear2 -> relu -> log_softmax over (padded, lane-dense) vocab.
        z1 = jnp.dot(cur, w1_ref[...], preferred_element_type=jnp.float32) + b1_ref[...]
        z2 = jnp.dot(z1, w2_ref[...], preferred_element_type=jnp.float32) + b2_ref[...]
        z2 = jnp.maximum(z2, 0.0)                              # relu
        col = jax.lax.broadcasted_iota(jnp.int32, z2.shape, 1)
        z2 = jnp.where(col < V, z2, -1e30)                     # mask padded vocab lanes
        m = jnp.max(z2, axis=-1, keepdims=True)
        lse = jnp.log(jnp.sum(jnp.exp(z2 - m), axis=-1, keepdims=True)) + m
        out_ref[...] = z2 - lse                                # log_softmax

    return kernel


# ----------------------------------------------------------------------------
# Full module forward (single pallas_call).
# ----------------------------------------------------------------------------
@functools.partial(jax.jit, static_argnames=("hidden_dim", "num_layers", "vocab"))
def forward(params, tokens, hidden_dim, num_layers, vocab, hidden=None):
    S, B = tokens.shape
    E = params["embedding"].shape[1]
    B_pad = max(8, _round_up(B, 8))
    V_pad = max(128, _round_up(vocab, 128))

    if hidden is None:
        h_0 = jnp.zeros((num_layers, B_pad, hidden_dim), jnp.float32)
        c_0 = jnp.zeros((num_layers, B_pad, hidden_dim), jnp.float32)
    else:
        h_raw, c_raw = hidden
        pad = ((0, 0), (0, B_pad - B), (0, 0))
        h_0 = jnp.pad(h_raw, pad)
        c_0 = jnp.pad(c_raw, pad)

    # Embedding gather kept as tiny plain-JAX glue; batch zero-padded to 8 sublanes.
    x = jnp.take(params["embedding"], tokens, axis=0)          # (S, B, E)
    x = jnp.pad(x, ((0, 0), (0, B_pad - B), (0, 0)))
    x_flat = x.reshape(S * B_pad, E)

    # Pad head output dim to 128 lanes (masked inside the kernel before LSE).
    w2_pad = jnp.pad(params["w2_t"], ((0, 0), (0, V_pad - vocab)))
    b2_pad = jnp.pad(params["b2"], ((0, 0), (0, V_pad - vocab)))

    inputs = [x_flat, h_0, c_0]
    for layer in range(num_layers):
        lp = params["lstm"][layer]
        inputs += [lp["w_ih_t"], lp["w_hh_t"], lp["b"]]
    inputs += [params["w1_t"], params["b1"], w2_pad, b2_pad]

    kernel = make_fused_kernel(num_layers, S, B_pad, hidden_dim, vocab)
    out_pad, h_n_pad, c_n_pad = pl.pallas_call(
        kernel,
        out_shape=(
            jax.ShapeDtypeStruct((S * B_pad, V_pad), jnp.float32),
            jax.ShapeDtypeStruct((num_layers, B_pad, hidden_dim), jnp.float32),
            jax.ShapeDtypeStruct((num_layers, B_pad, hidden_dim), jnp.float32),
        ),
        scratch_shapes=[pltpu.VMEM((S * B_pad, hidden_dim), jnp.float32)],
    )(*inputs)

    out = out_pad.reshape(S, B_pad, V_pad)[:, :B, :vocab].reshape(S * B, vocab)
    h_n = h_n_pad[:, :B, :]
    c_n = c_n_pad[:, :B, :]
    return out, (h_n, c_n)


# ----------------------------------------------------------------------------
# Parameter init (PyTorch-convention weights, pre-transposed for row-major matmul)
# ----------------------------------------------------------------------------
def init_params(key, length, embedding_dim, hidden_dim, num_layers):
    ks = jax.random.split(key, 4 + 4 * num_layers)
    p = {}
    p["embedding"] = 0.1 * jax.random.normal(ks[0], (length, embedding_dim), jnp.float32)
    p["lstm"] = []
    for layer in range(num_layers):
        in_dim = embedding_dim if layer == 0 else hidden_dim
        k0, k1, k2, k3 = jax.random.split(ks[1 + layer], 4)
        w_ih = 0.1 * jax.random.normal(k0, (4 * hidden_dim, in_dim), jnp.float32)
        w_hh = 0.1 * jax.random.normal(k1, (4 * hidden_dim, hidden_dim), jnp.float32)
        b_ih = 0.1 * jax.random.normal(k2, (4 * hidden_dim,), jnp.float32)
        b_hh = 0.1 * jax.random.normal(k3, (4 * hidden_dim,), jnp.float32)
        p["lstm"].append({
            "w_ih_t": w_ih.T,                                  # (in_dim, 4H)
            "w_hh_t": w_hh.T,                                  # (H, 4H)
            "b": (b_ih + b_hh).reshape(1, 4 * hidden_dim),     # (1, 4H)
        })
    kw1, kb1 = jax.random.split(ks[1 + num_layers], 2)
    kw2, kb2 = jax.random.split(ks[2 + num_layers], 2)
    p["w1_t"] = 0.1 * jax.random.normal(kw1, (hidden_dim, 256), jnp.float32)
    p["b1"] = 0.1 * jax.random.normal(kb1, (1, 256), jnp.float32)
    p["w2_t"] = 0.1 * jax.random.normal(kw2, (256, length), jnp.float32)
    p["b2"] = 0.1 * jax.random.normal(kb2, (1, length), jnp.float32)
    return p


# ----------------------------------------------------------------------------
# Pure-JAX reference (correctness check)
# ----------------------------------------------------------------------------
def forward_ref(params, tokens, hidden_dim, num_layers):
    S, B = tokens.shape
    H = hidden_dim
    hp = jax.lax.Precision.HIGHEST
    x = jnp.take(params["embedding"], tokens, axis=0)          # (S, B, E)
    h = [jnp.zeros((B, H), jnp.float32) for _ in range(num_layers)]
    c = [jnp.zeros((B, H), jnp.float32) for _ in range(num_layers)]
    cur = x
    for layer in range(num_layers):
        lp = params["lstm"][layer]
        hl, cl = h[layer], c[layer]
        ys = []
        for t in range(S):
            g = (jnp.dot(cur[t], lp["w_ih_t"], precision=hp)
                 + jnp.dot(hl, lp["w_hh_t"], precision=hp) + lp["b"])
            i_g = jax.nn.sigmoid(g[:, 0 * H:1 * H])
            f_g = jax.nn.sigmoid(g[:, 1 * H:2 * H])
            g_g = jnp.tanh(g[:, 2 * H:3 * H])
            o_g = jax.nn.sigmoid(g[:, 3 * H:4 * H])
            cl = f_g * cl + i_g * g_g
            hl = o_g * jnp.tanh(cl)
            ys.append(hl)
        cur = jnp.stack(ys, axis=0)
        h[layer], c[layer] = hl, cl
    flat = cur.reshape(S * B, H)
    z1 = jnp.dot(flat, params["w1_t"], precision=hp) + params["b1"]
    z2 = jnp.dot(z1, params["w2_t"], precision=hp) + params["b2"]
    z2 = jnp.maximum(z2, 0.0)
    out = jax.nn.log_softmax(z2, axis=-1)
    return out, (jnp.stack(h, axis=0), jnp.stack(c, axis=0))


if __name__ == "__main__":
    length = 64          # vocab size
    embedding_dim = 16
    hidden_dim = 32
    num_layers = 2
    seq_len = 8
    batch_size = 2

    key = jax.random.PRNGKey(0)
    pkey, dkey = jax.random.split(key)
    params = init_params(pkey, length, embedding_dim, hidden_dim, num_layers)
    tokens = jax.random.randint(dkey, (seq_len, batch_size), 0, length, jnp.int32)

    out, (h_n, c_n) = forward(params, tokens, hidden_dim, num_layers, length)
    jax.block_until_ready((out, h_n, c_n))

    assert out.shape == (seq_len * batch_size, length)
    assert h_n.shape == (num_layers, batch_size, hidden_dim)
    assert c_n.shape == (num_layers, batch_size, hidden_dim)
    # log_softmax rows should sum to ~1 in prob space
    assert bool(jnp.allclose(jnp.sum(jnp.exp(out), axis=-1), 1.0, atol=1e-4))

    # Cross-check against a pure-JAX reference implementation.
    out_ref, (h_ref, c_ref) = forward_ref(params, tokens, hidden_dim, num_layers)
    assert bool(jnp.allclose(out, out_ref, atol=2e-3, rtol=2e-3))
    assert bool(jnp.allclose(h_n, h_ref, atol=2e-3, rtol=2e-3))
    assert bool(jnp.allclose(c_n, c_ref, atol=2e-3, rtol=2e-3))

    print("KERNEL_OK")
</pallas_src>

<mosaic_0001>
module attributes {stable_mosaic.version = 11 : i64} {
  func.func @kernel(%arg0: memref<64x16xf32, #tpu.memory_space<vmem>>, %arg1: memref<2x8x32xf32, #tpu.memory_space<vmem>>, %arg2: memref<2x8x32xf32, #tpu.memory_space<vmem>>, %arg3: memref<16x128xf32, #tpu.memory_space<vmem>>, %arg4: memref<32x128xf32, #tpu.memory_space<vmem>>, %arg5: memref<1x128xf32, #tpu.memory_space<vmem>>, %arg6: memref<32x128xf32, #tpu.memory_space<vmem>>, %arg7: memref<32x128xf32, #tpu.memory_space<vmem>>, %arg8: memref<1x128xf32, #tpu.memory_space<vmem>>, %arg9: memref<32x256xf32, #tpu.memory_space<vmem>>, %arg10: memref<1x256xf32, #tpu.memory_space<vmem>>, %arg11: memref<256x128xf32, #tpu.memory_space<vmem>>, %arg12: memref<1x128xf32, #tpu.memory_space<vmem>>, %arg13: memref<64x128xf32, #tpu.memory_space<vmem>>, %arg14: memref<2x8x32xf32, #tpu.memory_space<vmem>>, %arg15: memref<2x8x32xf32, #tpu.memory_space<vmem>>, %arg16: memref<64x32xf32, #tpu.memory_space<vmem>>) attributes {dimension_semantics = [], scalar_prefetch = 0 : i64, scratch_operands = 1 : i64, tpu.core_type = #tpu.core_type<tc>} {
    %c0 = arith.constant 0 : index
    %c0_0 = arith.constant 0 : index
    %0 = vector.load %arg0[%c0, %c0_0] : memref<64x16xf32, #tpu.memory_space<vmem>>, vector<64x16xf32>
    %c0_1 = arith.constant 0 : index
    %c0_2 = arith.constant 0 : index
    %1 = vector.load %arg3[%c0_1, %c0_2] : memref<16x128xf32, #tpu.memory_space<vmem>>, vector<16x128xf32>
    %c0_3 = arith.constant 0 : index
    %c0_4 = arith.constant 0 : index
    %2 = vector.load %arg4[%c0_3, %c0_4] : memref<32x128xf32, #tpu.memory_space<vmem>>, vector<32x128xf32>
    %c0_5 = arith.constant 0 : index
    %c0_6 = arith.constant 0 : index
    %3 = vector.load %arg5[%c0_5, %c0_6] : memref<1x128xf32, #tpu.memory_space<vmem>>, vector<1x128xf32>
    %cst = arith.constant dense<0.000000e+00> : vector<64x128xf32>
    %4 = tpu.matmul %0, %1, %cst {dimension_numbers = #tpu.dot_dimension_numbers<[1], [0], [0], [1], [0, 0, 1, 1], [], []>} : vector<64x16xf32>, vector<16x128xf32>, vector<64x128xf32> -> vector<64x128xf32>
    %5 = vector.broadcast %3 : vector<1x128xf32> to vector<64x128xf32>
    %6 = arith.addf %4, %5 : vector<64x128xf32>
    %c0_7 = arith.constant 0 : index
    %c0_8 = arith.constant 0 : index
    %c0_9 = arith.constant 0 : index
    %7 = vector.load %arg1[%c0_7, %c0_8, %c0_9] : memref<2x8x32xf32, #tpu.memory_space<vmem>>, vector<1x8x32xf32>
    %8 = vector.shape_cast %7 : vector<1x8x32xf32> to vector<8x32xf32>
    %c0_10 = arith.constant 0 : index
    %c0_11 = arith.constant 0 : index
    %c0_12 = arith.constant 0 : index
    %9 = vector.load %arg2[%c0_10, %c0_11, %c0_12] : memref<2x8x32xf32, #tpu.memory_space<vmem>>, vector<1x8x32xf32>
    %10 = vector.shape_cast %9 : vector<1x8x32xf32> to vector<8x32xf32>
    %11 = vector.extract_strided_slice %6 {offsets = [0, 0], sizes = [8, 128], strides = [1, 1]} : vector<64x128xf32> to vector<8x128xf32>
    %cst_13 = arith.constant dense<0.000000e+00> : vector<8x128xf32>
    %12 = tpu.matmul %8, %2, %cst_13 {dimension_numbers = #tpu.dot_dimension_numbers<[1], [0], [0], [1], [0, 0, 1, 1], [], []>} : vector<8x32xf32>, vector<32x128xf32>, vector<8x128xf32> -> vector<8x128xf32>
    %13 = arith.addf %11, %12 : vector<8x128xf32>
    %14 = vector.extract_strided_slice %13 {offsets = [0, 0], sizes = [8, 32], strides = [1, 1]} : vector<8x128xf32> to vector<8x32xf32>
    %15 = arith.negf %14 : vector<8x32xf32>
    %16 = math.exp %15 : vector<8x32xf32>
    %cst_14 = arith.constant 1.000000e+00 : f32
    %17 = vector.broadcast %cst_14 : f32 to vector<8x32xf32>
    %18 = arith.addf %17, %16 : vector<8x32xf32>
    %19 = arith.divf %17, %18 : vector<8x32xf32>
    %20 = vector.extract_strided_slice %13 {offsets = [0, 32], sizes = [8, 32], strides = [1, 1]} : vector<8x128xf32> to vector<8x32xf32>
    %21 = arith.negf %20 : vector<8x32xf32>
    %22 = math.exp %21 : vector<8x32xf32>
    %cst_15 = arith.constant 1.000000e+00 : f32
    %23 = vector.broadcast %cst_15 : f32 to vector<8x32xf32>
    %24 = arith.addf %23, %22 : vector<8x32xf32>
    %25 = arith.divf %23, %24 : vector<8x32xf32>
    %26 = vector.extract_strided_slice %13 {offsets = [0, 64], sizes = [8, 32], strides = [1, 1]} : vector<8x128xf32> to vector<8x32xf32>
    %27 = math.tanh %26 : vector<8x32xf32>
    %28 = vector.extract_strided_slice %13 {offsets = [0, 96], sizes = [8, 32], strides = [1, 1]} : vector<8x128xf32> to vector<8x32xf32>
    %29 = arith.negf %28 : vector<8x32xf32>
    %30 = math.exp %29 : vector<8x32xf32>
    %cst_16 = arith.constant 1.000000e+00 : f32
    %31 = vector.broadcast %cst_16 : f32 to vector<8x32xf32>
    %32 = arith.addf %31, %30 : vector<8x32xf32>
    %33 = arith.divf %31, %32 : vector<8x32xf32>
    %34 = arith.mulf %25, %10 : vector<8x32xf32>
    %35 = arith.mulf %19, %27 : vector<8x32xf32>
    %36 = arith.addf %34, %35 : vector<8x32xf32>
    %37 = math.tanh %36 : vector<8x32xf32>
    %38 = arith.mulf %33, %37 : vector<8x32xf32>
    %c0_17 = arith.constant 0 : index
    %c0_18 = arith.constant 0 : index
    %39 = vector.load %arg16[%c0_17, %c0_18] : memref<64x32xf32, #tpu.memory_space<vmem>>, vector<8x32xf32>
    tpu.vector_store %arg16[%c0_17, %c0_18], %38 {strides = array<i32>} : memref<64x32xf32, #tpu.memory_space<vmem>>, vector<8x32xf32>,
    %40 = vector.extract_strided_slice %6 {offsets = [8, 0], sizes = [8, 128], strides = [1, 1]} : vector<64x128xf32> to vector<8x128xf32>
    %cst_19 = arith.constant dense<0.000000e+00> : vector<8x128xf32>
    %41 = tpu.matmul %38, %2, %cst_19 {dimension_numbers = #tpu.dot_dimension_numbers<[1], [0], [0], [1], [0, 0, 1, 1], [], []>} : vector<8x32xf32>, vector<32x128xf32>, vector<8x128xf32> -> vector<8x128xf32>
    %42 = arith.addf %40, %41 : vector<8x128xf32>
    %43 = vector.extract_strided_slice %42 {offsets = [0, 0], sizes = [8, 32], strides = [1, 1]} : vector<8x128xf32> to vector<8x32xf32>
    %44 = arith.negf %43 : vector<8x32xf32>
    %45 = math.exp %44 : vector<8x32xf32>
    %cst_20 = arith.constant 1.000000e+00 : f32
    %46 = vector.broadcast %cst_20 : f32 to vector<8x32xf32>
    %47 = arith.addf %46, %45 : vector<8x32xf32>
    %48 = arith.divf %46, %47 : vector<8x32xf32>
    %49 = vector.extract_strided_slice %42 {offsets = [0, 32], sizes = [8, 32], strides = [1, 1]} : vector<8x128xf32> to vector<8x32xf32>
    %50 = arith.negf %49 : vector<8x32xf32>
    %51 = math.exp %50 : vector<8x32xf32>
    %cst_21 = arith.constant 1.000000e+00 : f32
    %52 = vector.broadcast %cst_21 : f32 to vector<8x32xf32>
    %53 = arith.addf %52, %51 : vector<8x32xf32>
    %54 = arith.divf %52, %53 : vector<8x32xf32>
    %55 = vector.extract_strided_slice %42 {offsets = [0, 64], sizes = [8, 32], strides = [1, 1]} : vector<8x128xf32> to vector<8x32xf32>
    %56 = math.tanh %55 : vector<8x32xf32>
    %57 = vector.extract_strided_slice %42 {offsets = [0, 96], sizes = [8, 32], strides = [1, 1]} : vector<8x128xf32> to vector<8x32xf32>
    %58 = arith.negf %57 : vector<8x32xf32>
    %59 = math.exp %58 : vector<8x32xf32>
    %cst_22 = arith.constant 1.000000e+00 : f32
    %60 = vector.broadcast %cst_22 : f32 to vector<8x32xf32>
    %61 = arith.addf %60, %59 : vector<8x32xf32>
    %62 = arith.divf %60, %61 : vector<8x32xf32>
    %63 = arith.mulf %54, %36 : vector<8x32xf32>
    %64 = arith.mulf %48, %56 : vector<8x32xf32>
    %65 = arith.addf %63, %64 : vector<8x32xf32>
    %66 = math.tanh %65 : vector<8x32xf32>
    %67 = arith.mulf %62, %66 : vector<8x32xf32>
    %c8 = arith.constant 8 : index
    %c0_23 = arith.constant 0 : index
    %68 = vector.load %arg16[%c8, %c0_23] : memref<64x32xf32, #tpu.memory_space<vmem>>, vector<8x32xf32>
    tpu.vector_store %arg16[%c8, %c0_23], %67 {strides = array<i32>} : memref<64x32xf32, #tpu.memory_space<vmem>>, vector<8x32xf32>,
    %69 = vector.extract_strided_slice %6 {offsets = [16, 0], sizes = [8, 128], strides = [1, 1]} : vector<64x128xf32> to vector<8x128xf32>
    %cst_24 = arith.constant dense<0.000000e+00> : vector<8x128xf32>
    %70 = tpu.matmul %67, %2, %cst_24 {dimension_numbers = #tpu.dot_dimension_numbers<[1], [0], [0], [1], [0, 0, 1, 1], [], []>} : vector<8x32xf32>, vector<32x128xf32>, vector<8x128xf32> -> vector<8x128xf32>
    %71 = arith.addf %69, %70 : vector<8x128xf32>
    %72 = vector.extract_strided_slice %71 {offsets = [0, 0], sizes = [8, 32], strides = [1, 1]} : vector<8x128xf32> to vector<8x32xf32>
    %73 = arith.negf %72 : vector<8x32xf32>
    %74 = math.exp %73 : vector<8x32xf32>
    %cst_25 = arith.constant 1.000000e+00 : f32
    %75 = vector.broadcast %cst_25 : f32 to vector<8x32xf32>
    %76 = arith.addf %75, %74 : vector<8x32xf32>
    %77 = arith.divf %75, %76 : vector<8x32xf32>
    %78 = vector.extract_strided_slice %71 {offsets = [0, 32], sizes = [8, 32], strides = [1, 1]} : vector<8x128xf32> to vector<8x32xf32>
    %79 = arith.negf %78 : vector<8x32xf32>
    %80 = math.exp %79 : vector<8x32xf32>
    %cst_26 = arith.constant 1.000000e+00 : f32
    %81 = vector.broadcast %cst_26 : f32 to vector<8x32xf32>
    %82 = arith.addf %81, %80 : vector<8x32xf32>
    %83 = arith.divf %81, %82 : vector<8x32xf32>
    %84 = vector.extract_strided_slice %71 {offsets = [0, 64], sizes = [8, 32], strides = [1, 1]} : vector<8x128xf32> to vector<8x32xf32>
    %85 = math.tanh %84 : vector<8x32xf32>
    %86 = vector.extract_strided_slice %71 {offsets = [0, 96], sizes = [8, 32], strides = [1, 1]} : vector<8x128xf32> to vector<8x32xf32>
    %87 = arith.negf %86 : vector<8x32xf32>
    %88 = math.exp %87 : vector<8x32xf32>
    %cst_27 = arith.constant 1.000000e+00 : f32
    %89 = vector.broadcast %cst_27 : f32 to vector<8x32xf32>
    %90 = arith.addf %89, %88 : vector<8x32xf32>
    %91 = arith.divf %89, %90 : vector<8x32xf32>
    %92 = arith.mulf %83, %65 : vector<8x32xf32>
    %93 = arith.mulf %77, %85 : vector<8x32xf32>
    %94 = arith.addf %92, %93 : vector<8x32xf32>
    %95 = math.tanh %94 : vector<8x32xf32>
    %96 = arith.mulf %91, %95 : vector<8x32xf32>
    %c16 = arith.constant 16 : index
    %c0_28 = arith.constant 0 : index
    %97 = vector.load %arg16[%c16, %c0_28] : memref<64x32xf32, #tpu.memory_space<vmem>>, vector<8x32xf32>
    tpu.vector_store %arg16[%c16, %c0_28], %96 {strides = array<i32>} : memref<64x32xf32, #tpu.memory_space<vmem>>, vector<8x32xf32>,
    %98 = vector.extract_strided_slice %6 {offsets = [24, 0], sizes = [8, 128], strides = [1, 1]} : vector<64x128xf32> to vector<8x128xf32>
    %cst_29 = arith.constant dense<0.000000e+00> : vector<8x128xf32>
    %99 = tpu.matmul %96, %2, %cst_29 {dimension_numbers = #tpu.dot_dimension_numbers<[1], [0], [0], [1], [0, 0, 1, 1], [], []>} : vector<8x32xf32>, vector<32x128xf32>, vector<8x128xf32> -> vector<8x128xf32>
    %100 = arith.addf %98, %99 : vector<8x128xf32>
    %101 = vector.extract_strided_slice %100 {offsets = [0, 0], sizes = [8, 32], strides = [1, 1]} : vector<8x128xf32> to vector<8x32xf32>
    %102 = arith.negf %101 : vector<8x32xf32>
    %103 = math.exp %102 : vector<8x32xf32>
    %cst_30 = arith.constant 1.000000e+00 : f32
    %104 = vector.broadcast %cst_30 : f32 to vector<8x32xf32>
    %105 = arith.addf %104, %103 : vector<8x32xf32>
    %106 = arith.divf %104, %105 : vector<8x32xf32>
    %107 = vector.extract_strided_slice %100 {offsets = [0, 32], sizes = [8, 32], strides = [1, 1]} : vector<8x128xf32> to vector<8x32xf32>
    %108 = arith.negf %107 : vector<8x32xf32>
    %109 = math.exp %108 : vector<8x32xf32>
    %cst_31 = arith.constant 1.000000e+00 : f32
    %110 = vector.broadcast %cst_31 : f32 to vector<8x32xf32>
    %111 = arith.addf %110, %109 : vector<8x32xf32>
    %112 = arith.divf %110, %111 : vector<8x32xf32>
    %113 = vector.extract_strided_slice %100 {offsets = [0, 64], sizes = [8, 32], strides = [1, 1]} : vector<8x128xf32> to vector<8x32xf32>
    %114 = math.tanh %113 : vector<8x32xf32>
    %115 = vector.extract_strided_slice %100 {offsets = [0, 96], sizes = [8, 32], strides = [1, 1]} : vector<8x128xf32> to vector<8x32xf32>
    %116 = arith.negf %115 : vector<8x32xf32>
    %117 = math.exp %116 : vector<8x32xf32>
    %cst_32 = arith.constant 1.000000e+00 : f32
    %118 = vector.broadcast %cst_32 : f32 to vector<8x32xf32>
    %119 = arith.addf %118, %117 : vector<8x32xf32>
    %120 = arith.divf %118, %119 : vector<8x32xf32>
    %121 = arith.mulf %112, %94 : vector<8x32xf32>
    %122 = arith.mulf %106, %114 : vector<8x32xf32>
    %123 = arith.addf %121, %122 : vector<8x32xf32>
    %124 = math.tanh %123 : vector<8x32xf32>
    %125 = arith.mulf %120, %124 : vector<8x32xf32>
    %c24 = arith.constant 24 : index
    %c0_33 = arith.constant 0 : index
    %126 = vector.load %arg16[%c24, %c0_33] : memref<64x32xf32, #tpu.memory_space<vmem>>, vector<8x32xf32>
    tpu.vector_store %arg16[%c24, %c0_33], %125 {strides = array<i32>} : memref<64x32xf32, #tpu.memory_space<vmem>>, vector<8x32xf32>,
    %127 = vector.extract_strided_slice %6 {offsets = [32, 0], sizes = [8, 128], strides = [1, 1]} : vector<64x128xf32> to vector<8x128xf32>
    %cst_34 = arith.constant dense<0.000000e+00> : vector<8x128xf32>
    %128 = tpu.matmul %125, %2, %cst_34 {dimension_numbers = #tpu.dot_dimension_numbers<[1], [0], [0], [1], [0, 0, 1, 1], [], []>} : vector<8x32xf32>, vector<32x128xf32>, vector<8x128xf32> -> vector<8x128xf32>
    %129 = arith.addf %127, %128 : vector<8x128xf32>
    %130 = vector.extract_strided_slice %129 {offsets = [0, 0], sizes = [8, 32], strides = [1, 1]} : vector<8x128xf32> to vector<8x32xf32>
    %131 = arith.negf %130 : vector<8x32xf32>
    %132 = math.exp %131 : vector<8x32xf32>
    %cst_35 = arith.constant 1.000000e+00 : f32
    %133 = vector.broadcast %cst_35 : f32 to vector<8x32xf32>
    %134 = arith.addf %133, %132 : vector<8x32xf32>
    %135 = arith.divf %133, %134 : vector<8x32xf32>
    %136 = vector.extract_strided_slice %129 {offsets = [0, 32], sizes = [8, 32], strides = [1, 1]} : vector<8x128xf32> to vector<8x32xf32>
    %137 = arith.negf %136 : vector<8x32xf32>
    %138 = math.exp %137 : vector<8x32xf32>
    %cst_36 = arith.constant 1.000000e+00 : f32
    %139 = vector.broadcast %cst_36 : f32 to vector<8x32xf32>
    %140 = arith.addf %139, %138 : vector<8x32xf32>
    %141 = arith.divf %139, %140 : vector<8x32xf32>
    %142 = vector.extract_strided_slice %129 {offsets = [0, 64], sizes = [8, 32], strides = [1, 1]} : vector<8x128xf32> to vector<8x32xf32>
    %143 = math.tanh %142 : vector<8x32xf32>
    %144 = vector.extract_strided_slice %129 {offsets = [0, 96], sizes = [8, 32], strides = [1, 1]} : vector<8x128xf32> to vector<8x32xf32>
    %145 = arith.negf %144 : vector<8x32xf32>
    %146 = math.exp %145 : vector<8x32xf32>
    %cst_37 = arith.constant 1.000000e+00 : f32
    %147 = vector.broadcast %cst_37 : f32 to vector<8x32xf32>
    %148 = arith.addf %147, %146 : vector<8x32xf32>
    %149 = arith.divf %147, %148 : vector<8x32xf32>
    %150 = arith.mulf %141, %123 : vector<8x32xf32>
    %151 = arith.mulf %135, %143 : vector<8x32xf32>
    %152 = arith.addf %150, %151 : vector<8x32xf32>
    %153 = math.tanh %152 : vector<8x32xf32>
    %154 = arith.mulf %149, %153 : vector<8x32xf32>
    %c32 = arith.constant 32 : index
    %c0_38 = arith.constant 0 : index
    %155 = vector.load %arg16[%c32, %c0_38] : memref<64x32xf32, #tpu.memory_space<vmem>>, vector<8x32xf32>
    tpu.vector_store %arg16[%c32, %c0_38], %154 {strides = array<i32>} : memref<64x32xf32, #tpu.memory_space<vmem>>, vector<8x32xf32>,
    %156 = vector.extract_strided_slice %6 {offsets = [40, 0], sizes = [8, 128], strides = [1, 1]} : vector<64x128xf32> to vector<8x128xf32>
    %cst_39 = arith.constant dense<0.000000e+00> : vector<8x128xf32>
    %157 = tpu.matmul %154, %2, %cst_39 {dimension_numbers = #tpu.dot_dimension_numbers<[1], [0], [0], [1], [0, 0, 1, 1], [], []>} : vector<8x32xf32>, vector<32x128xf32>, vector<8x128xf32> -> vector<8x128xf32>
    %158 = arith.addf %156, %157 : vector<8x128xf32>
    %159 = vector.extract_strided_slice %158 {offsets = [0, 0], sizes = [8, 32], strides = [1, 1]} : vector<8x128xf32> to vector<8x32xf32>
    %160 = arith.negf %159 : vector<8x32xf32>
    %161 = math.exp %160 : vector<8x32xf32>
    %cst_40 = arith.constant 1.000000e+00 : f32
    %162 = vector.broadcast %cst_40 : f32 to vector<8x32xf32>
    %163 = arith.addf %162, %161 : vector<8x32xf32>
    %164 = arith.divf %162, %163 : vector<8x32xf32>
    %165 = vector.extract_strided_slice %158 {offsets = [0, 32], sizes = [8, 32], strides = [1, 1]} : vector<8x128xf32> to vector<8x32xf32>
    %166 = arith.negf %165 : vector<8x32xf32>
    %167 = math.exp %166 : vector<8x32xf32>
    %cst_41 = arith.constant 1.000000e+00 : f32
    %168 = vector.broadcast %cst_41 : f32 to vector<8x32xf32>
    %169 = arith.addf %168, %167 : vector<8x32xf32>
    %170 = arith.divf %168, %169 : vector<8x32xf32>
    %171 = vector.extract_strided_slice %158 {offsets = [0, 64], sizes = [8, 32], strides = [1, 1]} : vector<8x128xf32> to vector<8x32xf32>
    %172 = math.tanh %171 : vector<8x32xf32>
    %173 = vector.extract_strided_slice %158 {offsets = [0, 96], sizes = [8, 32], strides = [1, 1]} : vector<8x128xf32> to vector<8x32xf32>
    %174 = arith.negf %173 : vector<8x32xf32>
    %175 = math.exp %174 : vector<8x32xf32>
    %cst_42 = arith.constant 1.000000e+00 : f32
    %176 = vector.broadcast %cst_42 : f32 to vector<8x32xf32>
    %177 = arith.addf %176, %175 : vector<8x32xf32>
    %178 = arith.divf %176, %177 : vector<8x32xf32>
    %179 = arith.mulf %170, %152 : vector<8x32xf32>
    %180 = arith.mulf %164, %172 : vector<8x32xf32>
    %181 = arith.addf %179, %180 : vector<8x32xf32>
    %182 = math.tanh %181 : vector<8x32xf32>
    %183 = arith.mulf %178, %182 : vector<8x32xf32>
    %c40 = arith.constant 40 : index
    %c0_43 = arith.constant 0 : index
    %184 = vector.load %arg16[%c40, %c0_43] : memref<64x32xf32, #tpu.memory_space<vmem>>, vector<8x32xf32>
    tpu.vector_store %arg16[%c40, %c0_43], %183 {strides = array<i32>} : memref<64x32xf32, #tpu.memory_space<vmem>>, vector<8x32xf32>,
    %185 = vector.extract_strided_slice %6 {offsets = [48, 0], sizes = [8, 128], strides = [1, 1]} : vector<64x128xf32> to vector<8x128xf32>
    %cst_44 = arith.constant dense<0.000000e+00> : vector<8x128xf32>
    %186 = tpu.matmul %183, %2, %cst_44 {dimension_numbers = #tpu.dot_dimension_numbers<[1], [0], [0], [1], [0, 0, 1, 1], [], []>} : vector<8x32xf32>, vector<32x128xf32>, vector<8x128xf32> -> vector<8x128xf32>
    %187 = arith.addf %185, %186 : vector<8x128xf32>
    %188 = vector.extract_strided_slice %187 {offsets = [0, 0], sizes = [8, 32], strides = [1, 1]} : vector<8x128xf32> to vector<8x32xf32>
    %189 = arith.negf %188 : vector<8x32xf32>
    %190 = math.exp %189 : vector<8x32xf32>
    %cst_45 = arith.constant 1.000000e+00 : f32
    %191 = vector.broadcast %cst_45 : f32 to vector<8x32xf32>
    %192 = arith.addf %191, %190 : vector<8x32xf32>
    %193 = arith.divf %191, %192 : vector<8x32xf32>
    %194 = vector.extract_strided_slice %187 {offsets = [0, 32], sizes = [8, 32], strides = [1, 1]} : vector<8x128xf32> to vector<8x32xf32>
    %195 = arith.negf %194 : vector<8x32xf32>
    %196 = math.exp %195 : vector<8x32xf32>
    %cst_46 = arith.constant 1.000000e+00 : f32
    %197 = vector.broadcast %cst_46 : f32 to vector<8x32xf32>
    %198 = arith.addf %197, %196 : vector<8x32xf32>
    %199 = arith.divf %197, %198 : vector<8x32xf32>
    %200 = vector.extract_strided_slice %187 {offsets = [0, 64], sizes = [8, 32], strides = [1, 1]} : vector<8x128xf32> to vector<8x32xf32>
    %201 = math.tanh %200 : vector<8x32xf32>
    %202 = vector.extract_strided_slice %187 {offsets = [0, 96], sizes = [8, 32], strides = [1, 1]} : vector<8x128xf32> to vector<8x32xf32>
    %203 = arith.negf %202 : vector<8x32xf32>
    %204 = math.exp %203 : vector<8x32xf32>
    %cst_47 = arith.constant 1.000000e+00 : f32
    %205 = vector.broadcast %cst_47 : f32 to vector<8x32xf32>
    %206 = arith.addf %205, %204 : vector<8x32xf32>
    %207 = arith.divf %205, %206 : vector<8x32xf32>
    %208 = arith.mulf %199, %181 : vector<8x32xf32>
    %209 = arith.mulf %193, %201 : vector<8x32xf32>
    %210 = arith.addf %208, %209 : vector<8x32xf32>
    %211 = math.tanh %210 : vector<8x32xf32>
    %212 = arith.mulf %207, %211 : vector<8x32xf32>
    %c48 = arith.constant 48 : index
    %c0_48 = arith.constant 0 : index
    %213 = vector.load %arg16[%c48, %c0_48] : memref<64x32xf32, #tpu.memory_space<vmem>>, vector<8x32xf32>
    tpu.vector_store %arg16[%c48, %c0_48], %212 {strides = array<i32>} : memref<64x32xf32, #tpu.memory_space<vmem>>, vector<8x32xf32>,
    %214 = vector.extract_strided_slice %6 {offsets = [56, 0], sizes = [8, 128], strides = [1, 1]} : vector<64x128xf32> to vector<8x128xf32>
    %cst_49 = arith.constant dense<0.000000e+00> : vector<8x128xf32>
    %215 = tpu.matmul %212, %2, %cst_49 {dimension_numbers = #tpu.dot_dimension_numbers<[1], [0], [0], [1], [0, 0, 1, 1], [], []>} : vector<8x32xf32>, vector<32x128xf32>, vector<8x128xf32> -> vector<8x128xf32>
    %216 = arith.addf %214, %215 : vector<8x128xf32>
    %217 = vector.extract_strided_slice %216 {offsets = [0, 0], sizes = [8, 32], strides = [1, 1]} : vector<8x128xf32> to vector<8x32xf32>
    %218 = arith.negf %217 : vector<8x32xf32>
    %219 = math.exp %218 : vector<8x32xf32>
    %cst_50 = arith.constant 1.000000e+00 : f32
    %220 = vector.broadcast %cst_50 : f32 to vector<8x32xf32>
    %221 = arith.addf %220, %219 : vector<8x32xf32>
    %222 = arith.divf %220, %221 : vector<8x32xf32>
    %223 = vector.extract_strided_slice %216 {offsets = [0, 32], sizes = [8, 32], strides = [1, 1]} : vector<8x128xf32> to vector<8x32xf32>
    %224 = arith.negf %223 : vector<8x32xf32>
    %225 = math.exp %224 : vector<8x32xf32>
    %cst_51 = arith.constant 1.000000e+00 : f32
    %226 = vector.broadcast %cst_51 : f32 to vector<8x32xf32>
    %227 = arith.addf %226, %225 : vector<8x32xf32>
    %228 = arith.divf %226, %227 : vector<8x32xf32>
    %229 = vector.extract_strided_slice %216 {offsets = [0, 64], sizes = [8, 32], strides = [1, 1]} : vector<8x128xf32> to vector<8x32xf32>
    %230 = math.tanh %229 : vector<8x32xf32>
    %231 = vector.extract_strided_slice %216 {offsets = [0, 96], sizes = [8, 32], strides = [1, 1]} : vector<8x128xf32> to vector<8x32xf32>
    %232 = arith.negf %231 : vector<8x32xf32>
    %233 = math.exp %232 : vector<8x32xf32>
    %cst_52 = arith.constant 1.000000e+00 : f32
    %234 = vector.broadcast %cst_52 : f32 to vector<8x32xf32>
    %235 = arith.addf %234, %233 : vector<8x32xf32>
    %236 = arith.divf %234, %235 : vector<8x32xf32>
    %237 = arith.mulf %228, %210 : vector<8x32xf32>
    %238 = arith.mulf %222, %230 : vector<8x32xf32>
    %239 = arith.addf %237, %238 : vector<8x32xf32>
    %240 = math.tanh %239 : vector<8x32xf32>
    %241 = arith.mulf %236, %240 : vector<8x32xf32>
    %c56 = arith.constant 56 : index
    %c0_53 = arith.constant 0 : index
    %242 = vector.load %arg16[%c56, %c0_53] : memref<64x32xf32, #tpu.memory_space<vmem>>, vector<8x32xf32>
    tpu.vector_store %arg16[%c56, %c0_53], %241 {strides = array<i32>} : memref<64x32xf32, #tpu.memory_space<vmem>>, vector<8x32xf32>,
    %c0_54 = arith.constant 0 : index
    %c0_55 = arith.constant 0 : index
    %c0_56 = arith.constant 0 : index
    %243 = vector.load %arg14[%c0_54, %c0_55, %c0_56] : memref<2x8x32xf32, #tpu.memory_space<vmem>>, vector<1x8x32xf32>
    %244 = vector.shape_cast %243 : vector<1x8x32xf32> to vector<8x32xf32>
    %245 = vector.shape_cast %241 : vector<8x32xf32> to vector<1x8x32xf32>
    tpu.vector_store %arg14[%c0_54, %c0_55, %c0_56], %245 {strides = array<i32>} : memref<2x8x32xf32, #tpu.memory_space<vmem>>, vector<1x8x32xf32>,
    %c0_57 = arith.constant 0 : index
    %c0_58 = arith.constant 0 : index
    %c0_59 = arith.constant 0 : index
    %246 = vector.load %arg15[%c0_57, %c0_58, %c0_59] : memref<2x8x32xf32, #tpu.memory_space<vmem>>, vector<1x8x32xf32>
    %247 = vector.shape_cast %246 : vector<1x8x32xf32> to vector<8x32xf32>
    %248 = vector.shape_cast %239 : vector<8x32xf32> to vector<1x8x32xf32>
    tpu.vector_store %arg15[%c0_57, %c0_58, %c0_59], %248 {strides = array<i32>} : memref<2x8x32xf32, #tpu.memory_space<vmem>>, vector<1x8x32xf32>,
    %c0_60 = arith.constant 0 : index
    %c0_61 = arith.constant 0 : index
    %249 = vector.load %arg16[%c0_60, %c0_61] : memref<64x32xf32, #tpu.memory_space<vmem>>, vector<64x32xf32>
    %c0_62 = arith.constant 0 : index
    %c0_63 = arith.constant 0 : index
    %250 = vector.load %arg6[%c0_62, %c0_63] : memref<32x128xf32, #tpu.memory_space<vmem>>, vector<32x128xf32>
    %c0_64 = arith.constant 0 : index
    %c0_65 = arith.constant 0 : index
    %251 = vector.load %arg7[%c0_64, %c0_65] : memref<32x128xf32, #tpu.memory_space<vmem>>, vector<32x128xf32>
    %c0_66 = arith.constant 0 : index
    %c0_67 = arith.constant 0 : index
    %252 = vector.load %arg8[%c0_66, %c0_67] : memref<1x128xf32, #tpu.memory_space<vmem>>, vector<1x128xf32>
    %cst_68 = arith.constant dense<0.000000e+00> : vector<64x128xf32>
    %253 = tpu.matmul %249, %250, %cst_68 {dimension_numbers = #tpu.dot_dimension_numbers<[1], [0], [0], [1], [0, 0, 1, 1], [], []>} : vector<64x32xf32>, vector<32x128xf32>, vector<64x128xf32> -> vector<64x128xf32>
    %254 = vector.broadcast %252 : vector<1x128xf32> to vector<64x128xf32>
    %255 = arith.addf %253, %254 : vector<64x128xf32>
    %c1 = arith.constant 1 : index
    %c0_69 = arith.constant 0 : index
    %c0_70 = arith.constant 0 : index
    %256 = vector.load %arg1[%c1, %c0_69, %c0_70] : memref<2x8x32xf32, #tpu.memory_space<vmem>>, vector<1x8x32xf32>
    %257 = vector.shape_cast %256 : vector<1x8x32xf32> to vector<8x32xf32>
    %c1_71 = arith.constant 1 : index
    %c0_72 = arith.constant 0 : index
    %c0_73 = arith.constant 0 : index
    %258 = vector.load %arg2[%c1_71, %c0_72, %c0_73] : memref<2x8x32xf32, #tpu.memory_space<vmem>>, vector<1x8x32xf32>
    %259 = vector.shape_cast %258 : vector<1x8x32xf32> to vector<8x32xf32>
    %260 = vector.extract_strided_slice %255 {offsets = [0, 0], sizes = [8, 128], strides = [1, 1]} : vector<64x128xf32> to vector<8x128xf32>
    %cst_74 = arith.constant dense<0.000000e+00> : vector<8x128xf32>
    %261 = tpu.matmul %257, %251, %cst_74 {dimension_numbers = #tpu.dot_dimension_numbers<[1], [0], [0], [1], [0, 0, 1, 1], [], []>} : vector<8x32xf32>, vector<32x128xf32>, vector<8x128xf32> -> vector<8x128xf32>
    %262 = arith.addf %260, %261 : vector<8x128xf32>
    %263 = vector.extract_strided_slice %262 {offsets = [0, 0], sizes = [8, 32], strides = [1, 1]} : vector<8x128xf32> to vector<8x32xf32>
    %264 = arith.negf %263 : vector<8x32xf32>
    %265 = math.exp %264 : vector<8x32xf32>
    %cst_75 = arith.constant 1.000000e+00 : f32
    %266 = vector.broadcast %cst_75 : f32 to vector<8x32xf32>
    %267 = arith.addf %266, %265 : vector<8x32xf32>
    %268 = arith.divf %266, %267 : vector<8x32xf32>
    %269 = vector.extract_strided_slice %262 {offsets = [0, 32], sizes = [8, 32], strides = [1, 1]} : vector<8x128xf32> to vector<8x32xf32>
    %270 = arith.negf %269 : vector<8x32xf32>
    %271 = math.exp %270 : vector<8x32xf32>
    %cst_76 = arith.constant 1.000000e+00 : f32
    %272 = vector.broadcast %cst_76 : f32 to vector<8x32xf32>
    %273 = arith.addf %272, %271 : vector<8x32xf32>
    %274 = arith.divf %272, %273 : vector<8x32xf32>
    %275 = vector.extract_strided_slice %262 {offsets = [0, 64], sizes = [8, 32], strides = [1, 1]} : vector<8x128xf32> to vector<8x32xf32>
    %276 = math.tanh %275 : vector<8x32xf32>
    %277 = vector.extract_strided_slice %262 {offsets = [0, 96], sizes = [8, 32], strides = [1, 1]} : vector<8x128xf32> to vector<8x32xf32>
    %278 = arith.negf %277 : vector<8x32xf32>
    %279 = math.exp %278 : vector<8x32xf32>
    %cst_77 = arith.constant 1.000000e+00 : f32
    %280 = vector.broadcast %cst_77 : f32 to vector<8x32xf32>
    %281 = arith.addf %280, %279 : vector<8x32xf32>
    %282 = arith.divf %280, %281 : vector<8x32xf32>
    %283 = arith.mulf %274, %259 : vector<8x32xf32>
    %284 = arith.mulf %268, %276 : vector<8x32xf32>
    %285 = arith.addf %283, %284 : vector<8x32xf32>
    %286 = math.tanh %285 : vector<8x32xf32>
    %287 = arith.mulf %282, %286 : vector<8x32xf32>
    %c0_78 = arith.constant 0 : index
    %c0_79 = arith.constant 0 : index
    %288 = vector.load %arg16[%c0_78, %c0_79] : memref<64x32xf32, #tpu.memory_space<vmem>>, vector<8x32xf32>
    tpu.vector_store %arg16[%c0_78, %c0_79], %287 {strides = array<i32>} : memref<64x32xf32, #tpu.memory_space<vmem>>, vector<8x32xf32>,
    %289 = vector.extract_strided_slice %255 {offsets = [8, 0], sizes = [8, 128], strides = [1, 1]} : vector<64x128xf32> to vector<8x128xf32>
    %cst_80 = arith.constant dense<0.000000e+00> : vector<8x128xf32>
    %290 = tpu.matmul %287, %251, %cst_80 {dimension_numbers = #tpu.dot_dimension_numbers<[1], [0], [0], [1], [0, 0, 1, 1], [], []>} : vector<8x32xf32>, vector<32x128xf32>, vector<8x128xf32> -> vector<8x128xf32>
    %291 = arith.addf %289, %290 : vector<8x128xf32>
    %292 = vector.extract_strided_slice %291 {offsets = [0, 0], sizes = [8, 32], strides = [1, 1]} : vector<8x128xf32> to vector<8x32xf32>
    %293 = arith.negf %292 : vector<8x32xf32>
    %294 = math.exp %293 : vector<8x32xf32>
    %cst_81 = arith.constant 1.000000e+00 : f32
    %295 = vector.broadcast %cst_81 : f32 to vector<8x32xf32>
    %296 = arith.addf %295, %294 : vector<8x32xf32>
    %297 = arith.divf %295, %296 : vector<8x32xf32>
    %298 = vector.extract_strided_slice %291 {offsets = [0, 32], sizes = [8, 32], strides = [1, 1]} : vector<8x128xf32> to vector<8x32xf32>
    %299 = arith.negf %298 : vector<8x32xf32>
    %300 = math.exp %299 : vector<8x32xf32>
    %cst_82 = arith.constant 1.000000e+00 : f32
    %301 = vector.broadcast %cst_82 : f32 to vector<8x32xf32>
    %302 = arith.addf %301, %300 : vector<8x32xf32>
    %303 = arith.divf %301, %302 : vector<8x32xf32>
    %304 = vector.extract_strided_slice %291 {offsets = [0, 64], sizes = [8, 32], strides = [1, 1]} : vector<8x128xf32> to vector<8x32xf32>
    %305 = math.tanh %304 : vector<8x32xf32>
    %306 = vector.extract_strided_slice %291 {offsets = [0, 96], sizes = [8, 32], strides = [1, 1]} : vector<8x128xf32> to vector<8x32xf32>
    %307 = arith.negf %306 : vector<8x32xf32>
    %308 = math.exp %307 : vector<8x32xf32>
    %cst_83 = arith.constant 1.000000e+00 : f32
    %309 = vector.broadcast %cst_83 : f32 to vector<8x32xf32>
    %310 = arith.addf %309, %308 : vector<8x32xf32>
    %311 = arith.divf %309, %310 : vector<8x32xf32>
    %312 = arith.mulf %303, %285 : vector<8x32xf32>
    %313 = arith.mulf %297, %305 : vector<8x32xf32>
    %314 = arith.addf %312, %313 : vector<8x32xf32>
    %315 = math.tanh %314 : vector<8x32xf32>
    %316 = arith.mulf %311, %315 : vector<8x32xf32>
    %c8_84 = arith.constant 8 : index
    %c0_85 = arith.constant 0 : index
    %317 = vector.load %arg16[%c8_84, %c0_85] : memref<64x32xf32, #tpu.memory_space<vmem>>, vector<8x32xf32>
    tpu.vector_store %arg16[%c8_84, %c0_85], %316 {strides = array<i32>} : memref<64x32xf32, #tpu.memory_space<vmem>>, vector<8x32xf32>,
    %318 = vector.extract_strided_slice %255 {offsets = [16, 0], sizes = [8, 128], strides = [1, 1]} : vector<64x128xf32> to vector<8x128xf32>
    %cst_86 = arith.constant dense<0.000000e+00> : vector<8x128xf32>
    %319 = tpu.matmul %316, %251, %cst_86 {dimension_numbers = #tpu.dot_dimension_numbers<[1], [0], [0], [1], [0, 0, 1, 1], [], []>} : vector<8x32xf32>, vector<32x128xf32>, vector<8x128xf32> -> vector<8x128xf32>
    %320 = arith.addf %318, %319 : vector<8x128xf32>
    %321 = vector.extract_strided_slice %320 {offsets = [0, 0], sizes = [8, 32], strides = [1, 1]} : vector<8x128xf32> to vector<8x32xf32>
    %322 = arith.negf %321 : vector<8x32xf32>
    %323 = math.exp %322 : vector<8x32xf32>
    %cst_87 = arith.constant 1.000000e+00 : f32
    %324 = vector.broadcast %cst_87 : f32 to vector<8x32xf32>
    %325 = arith.addf %324, %323 : vector<8x32xf32>
    %326 = arith.divf %324, %325 : vector<8x32xf32>
    %327 = vector.extract_strided_slice %320 {offsets = [0, 32], sizes = [8, 32], strides = [1, 1]} : vector<8x128xf32> to vector<8x32xf32>
    %328 = arith.negf %327 : vector<8x32xf32>
    %329 = math.exp %328 : vector<8x32xf32>
    %cst_88 = arith.constant 1.000000e+00 : f32
    %330 = vector.broadcast %cst_88 : f32 to vector<8x32xf32>
    %331 = arith.addf %330, %329 : vector<8x32xf32>
    %332 = arith.divf %330, %331 : vector<8x32xf32>
    %333 = vector.extract_strided_slice %320 {offsets = [0, 64], sizes = [8, 32], strides = [1, 1]} : vector<8x128xf32> to vector<8x32xf32>
    %334 = math.tanh %333 : vector<8x32xf32>
    %335 = vector.extract_strided_slice %320 {offsets = [0, 96], sizes = [8, 32], strides = [1, 1]} : vector<8x128xf32> to vector<8x32xf32>
    %336 = arith.negf %335 : vector<8x32xf32>
    %337 = math.exp %336 : vector<8x32xf32>
    %cst_89 = arith.constant 1.000000e+00 : f32
    %338 = vector.broadcast %cst_89 : f32 to vector<8x32xf32>
    %339 = arith.addf %338, %337 : vector<8x32xf32>
    %340 = arith.divf %338, %339 : vector<8x32xf32>
    %341 = arith.mulf %332, %314 : vector<8x32xf32>
    %342 = arith.mulf %326, %334 : vector<8x32xf32>
    %343 = arith.addf %341, %342 : vector<8x32xf32>
    %344 = math.tanh %343 : vector<8x32xf32>
    %345 = arith.mulf %340, %344 : vector<8x32xf32>
    %c16_90 = arith.constant 16 : index
    %c0_91 = arith.constant 0 : index
    %346 = vector.load %arg16[%c16_90, %c0_91] : memref<64x32xf32, #tpu.memory_space<vmem>>, vector<8x32xf32>
    tpu.vector_store %arg16[%c16_90, %c0_91], %345 {strides = array<i32>} : memref<64x32xf32, #tpu.memory_space<vmem>>, vector<8x32xf32>,
    %347 = vector.extract_strided_slice %255 {offsets = [24, 0], sizes = [8, 128], strides = [1, 1]} : vector<64x128xf32> to vector<8x128xf32>
    %cst_92 = arith.constant dense<0.000000e+00> : vector<8x128xf32>
    %348 = tpu.matmul %345, %251, %cst_92 {dimension_numbers = #tpu.dot_dimension_numbers<[1], [0], [0], [1], [0, 0, 1, 1], [], []>} : vector<8x32xf32>, vector<32x128xf32>, vector<8x128xf32> -> vector<8x128xf32>
    %349 = arith.addf %347, %348 : vector<8x128xf32>
    %350 = vector.extract_strided_slice %349 {offsets = [0, 0], sizes = [8, 32], strides = [1, 1]} : vector<8x128xf32> to vector<8x32xf32>
    %351 = arith.negf %350 : vector<8x32xf32>
    %352 = math.exp %351 : vector<8x32xf32>
    %cst_93 = arith.constant 1.000000e+00 : f32
    %353 = vector.broadcast %cst_93 : f32 to vector<8x32xf32>
    %354 = arith.addf %353, %352 : vector<8x32xf32>
    %355 = arith.divf %353, %354 : vector<8x32xf32>
    %356 = vector.extract_strided_slice %349 {offsets = [0, 32], sizes = [8, 32], strides = [1, 1]} : vector<8x128xf32> to vector<8x32xf32>
    %357 = arith.negf %356 : vector<8x32xf32>
    %358 = math.exp %357 : vector<8x32xf32>
    %cst_94 = arith.constant 1.000000e+00 : f32
    %359 = vector.broadcast %cst_94 : f32 to vector<8x32xf32>
    %360 = arith.addf %359, %358 : vector<8x32xf32>
    %361 = arith.divf %359, %360 : vector<8x32xf32>
    %362 = vector.extract_strided_slice %349 {offsets = [0, 64], sizes = [8, 32], strides = [1, 1]} : vector<8x128xf32> to vector<8x32xf32>
    %363 = math.tanh %362 : vector<8x32xf32>
    %364 = vector.extract_strided_slice %349 {offsets = [0, 96], sizes = [8, 32], strides = [1, 1]} : vector<8x128xf32> to vector<8x32xf32>
    %365 = arith.negf %364 : vector<8x32xf32>
    %366 = math.exp %365 : vector<8x32xf32>
    %cst_95 = arith.constant 1.000000e+00 : f32
    %367 = vector.broadcast %cst_95 : f32 to vector<8x32xf32>
    %368 = arith.addf %367, %366 : vector<8x32xf32>
    %369 = arith.divf %367, %368 : vector<8x32xf32>
    %370 = arith.mulf %361, %343 : vector<8x32xf32>
    %371 = arith.mulf %355, %363 : vector<8x32xf32>
    %372 = arith.addf %370, %371 : vector<8x32xf32>
    %373 = math.tanh %372 : vector<8x32xf32>
    %374 = arith.mulf %369, %373 : vector<8x32xf32>
    %c24_96 = arith.constant 24 : index
    %c0_97 = arith.constant 0 : index
    %375 = vector.load %arg16[%c24_96, %c0_97] : memref<64x32xf32, #tpu.memory_space<vmem>>, vector<8x32xf32>
    tpu.vector_store %arg16[%c24_96, %c0_97], %374 {strides = array<i32>} : memref<64x32xf32, #tpu.memory_space<vmem>>, vector<8x32xf32>,
    %376 = vector.extract_strided_slice %255 {offsets = [32, 0], sizes = [8, 128], strides = [1, 1]} : vector<64x128xf32> to vector<8x128xf32>
    %cst_98 = arith.constant dense<0.000000e+00> : vector<8x128xf32>
    %377 = tpu.matmul %374, %251, %cst_98 {dimension_numbers = #tpu.dot_dimension_numbers<[1], [0], [0], [1], [0, 0, 1, 1], [], []>} : vector<8x32xf32>, vector<32x128xf32>, vector<8x128xf32> -> vector<8x128xf32>
    %378 = arith.addf %376, %377 : vector<8x128xf32>
    %379 = vector.extract_strided_slice %378 {offsets = [0, 0], sizes = [8, 32], strides = [1, 1]} : vector<8x128xf32> to vector<8x32xf32>
    %380 = arith.negf %379 : vector<8x32xf32>
    %381 = math.exp %380 : vector<8x32xf32>
    %cst_99 = arith.constant 1.000000e+00 : f32
    %382 = vector.broadcast %cst_99 : f32 to vector<8x32xf32>
    %383 = arith.addf %382, %381 : vector<8x32xf32>
    %384 = arith.divf %382, %383 : vector<8x32xf32>
    %385 = vector.extract_strided_slice %378 {offsets = [0, 32], sizes = [8, 32], strides = [1, 1]} : vector<8x128xf32> to vector<8x32xf32>
    %386 = arith.negf %385 : vector<8x32xf32>
    %387 = math.exp %386 : vector<8x32xf32>
    %cst_100 = arith.constant 1.000000e+00 : f32
    %388 = vector.broadcast %cst_100 : f32 to vector<8x32xf32>
    %389 = arith.addf %388, %387 : vector<8x32xf32>
    %390 = arith.divf %388, %389 : vector<8x32xf32>
    %391 = vector.extract_strided_slice %378 {offsets = [0, 64], sizes = [8, 32], strides = [1, 1]} : vector<8x128xf32> to vector<8x32xf32>
    %392 = math.tanh %391 : vector<8x32xf32>
    %393 = vector.extract_strided_slice %378 {offsets = [0, 96], sizes = [8, 32], strides = [1, 1]} : vector<8x128xf32> to vector<8x32xf32>
    %394 = arith.negf %393 : vector<8x32xf32>
    %395 = math.exp %394 : vector<8x32xf32>
    %cst_101 = arith.constant 1.000000e+00 : f32
    %396 = vector.broadcast %cst_101 : f32 to vector<8x32xf32>
    %397 = arith.addf %396, %395 : vector<8x32xf32>
    %398 = arith.divf %396, %397 : vector<8x32xf32>
    %399 = arith.mulf %390, %372 : vector<8x32xf32>
    %400 = arith.mulf %384, %392 : vector<8x32xf32>
    %401 = arith.addf %399, %400 : vector<8x32xf32>
    %402 = math.tanh %401 : vector<8x32xf32>
    %403 = arith.mulf %398, %402 : vector<8x32xf32>
    %c32_102 = arith.constant 32 : index
    %c0_103 = arith.constant 0 : index
    %404 = vector.load %arg16[%c32_102, %c0_103] : memref<64x32xf32, #tpu.memory_space<vmem>>, vector<8x32xf32>
    tpu.vector_store %arg16[%c32_102, %c0_103], %403 {strides = array<i32>} : memref<64x32xf32, #tpu.memory_space<vmem>>, vector<8x32xf32>,
    %405 = vector.extract_strided_slice %255 {offsets = [40, 0], sizes = [8, 128], strides = [1, 1]} : vector<64x128xf32> to vector<8x128xf32>
    %cst_104 = arith.constant dense<0.000000e+00> : vector<8x128xf32>
    %406 = tpu.matmul %403, %251, %cst_104 {dimension_numbers = #tpu.dot_dimension_numbers<[1], [0], [0], [1], [0, 0, 1, 1], [], []>} : vector<8x32xf32>, vector<32x128xf32>, vector<8x128xf32> -> vector<8x128xf32>
    %407 = arith.addf %405, %406 : vector<8x128xf32>
    %408 = vector.extract_strided_slice %407 {offsets = [0, 0], sizes = [8, 32], strides = [1, 1]} : vector<8x128xf32> to vector<8x32xf32>
    %409 = arith.negf %408 : vector<8x32xf32>
    %410 = math.exp %409 : vector<8x32xf32>
    %cst_105 = arith.constant 1.000000e+00 : f32
    %411 = vector.broadcast %cst_105 : f32 to vector<8x32xf32>
    %412 = arith.addf %411, %410 : vector<8x32xf32>
    %413 = arith.divf %411, %412 : vector<8x32xf32>
    %414 = vector.extract_strided_slice %407 {offsets = [0, 32], sizes = [8, 32], strides = [1, 1]} : vector<8x128xf32> to vector<8x32xf32>
    %415 = arith.negf %414 : vector<8x32xf32>
    %416 = math.exp %415 : vector<8x32xf32>
    %cst_106 = arith.constant 1.000000e+00 : f32
    %417 = vector.broadcast %cst_106 : f32 to vector<8x32xf32>
    %418 = arith.addf %417, %416 : vector<8x32xf32>
    %419 = arith.divf %417, %418 : vector<8x32xf32>
    %420 = vector.extract_strided_slice %407 {offsets = [0, 64], sizes = [8, 32], strides = [1, 1]} : vector<8x128xf32> to vector<8x32xf32>
    %421 = math.tanh %420 : vector<8x32xf32>
    %422 = vector.extract_strided_slice %407 {offsets = [0, 96], sizes = [8, 32], strides = [1, 1]} : vector<8x128xf32> to vector<8x32xf32>
    %423 = arith.negf %422 : vector<8x32xf32>
    %424 = math.exp %423 : vector<8x32xf32>
    %cst_107 = arith.constant 1.000000e+00 : f32
    %425 = vector.broadcast %cst_107 : f32 to vector<8x32xf32>
    %426 = arith.addf %425, %424 : vector<8x32xf32>
    %427 = arith.divf %425, %426 : vector<8x32xf32>
    %428 = arith.mulf %419, %401 : vector<8x32xf32>
    %429 = arith.mulf %413, %421 : vector<8x32xf32>
    %430 = arith.addf %428, %429 : vector<8x32xf32>
    %431 = math.tanh %430 : vector<8x32xf32>
    %432 = arith.mulf %427, %431 : vector<8x32xf32>
    %c40_108 = arith.constant 40 : index
    %c0_109 = arith.constant 0 : index
    %433 = vector.load %arg16[%c40_108, %c0_109] : memref<64x32xf32, #tpu.memory_space<vmem>>, vector<8x32xf32>
    tpu.vector_store %arg16[%c40_108, %c0_109], %432 {strides = array<i32>} : memref<64x32xf32, #tpu.memory_space<vmem>>, vector<8x32xf32>,
    %434 = vector.extract_strided_slice %255 {offsets = [48, 0], sizes = [8, 128], strides = [1, 1]} : vector<64x128xf32> to vector<8x128xf32>
    %cst_110 = arith.constant dense<0.000000e+00> : vector<8x128xf32>
    %435 = tpu.matmul %432, %251, %cst_110 {dimension_numbers = #tpu.dot_dimension_numbers<[1], [0], [0], [1], [0, 0, 1, 1], [], []>} : vector<8x32xf32>, vector<32x128xf32>, vector<8x128xf32> -> vector<8x128xf32>
    %436 = arith.addf %434, %435 : vector<8x128xf32>
    %437 = vector.extract_strided_slice %436 {offsets = [0, 0], sizes = [8, 32], strides = [1, 1]} : vector<8x128xf32> to vector<8x32xf32>
    %438 = arith.negf %437 : vector<8x32xf32>
    %439 = math.exp %438 : vector<8x32xf32>
    %cst_111 = arith.constant 1.000000e+00 : f32
    %440 = vector.broadcast %cst_111 : f32 to vector<8x32xf32>
    %441 = arith.addf %440, %439 : vector<8x32xf32>
    %442 = arith.divf %440, %441 : vector<8x32xf32>
    %443 = vector.extract_strided_slice %436 {offsets = [0, 32], sizes = [8, 32], strides = [1, 1]} : vector<8x128xf32> to vector<8x32xf32>
    %444 = arith.negf %443 : vector<8x32xf32>
    %445 = math.exp %444 : vector<8x32xf32>
    %cst_112 = arith.constant 1.000000e+00 : f32
    %446 = vector.broadcast %cst_112 : f32 to vector<8x32xf32>
    %447 = arith.addf %446, %445 : vector<8x32xf32>
    %448 = arith.divf %446, %447 : vector<8x32xf32>
    %449 = vector.extract_strided_slice %436 {offsets = [0, 64], sizes = [8, 32], strides = [1, 1]} : vector<8x128xf32> to vector<8x32xf32>
    %450 = math.tanh %449 : vector<8x32xf32>
    %451 = vector.extract_strided_slice %436 {offsets = [0, 96], sizes = [8, 32], strides = [1, 1]} : vector<8x128xf32> to vector<8x32xf32>
    %452 = arith.negf %451 : vector<8x32xf32>
    %453 = math.exp %452 : vector<8x32xf32>
    %cst_113 = arith.constant 1.000000e+00 : f32
    %454 = vector.broadcast %cst_113 : f32 to vector<8x32xf32>
    %455 = arith.addf %454, %453 : vector<8x32xf32>
    %456 = arith.divf %454, %455 : vector<8x32xf32>
    %457 = arith.mulf %448, %430 : vector<8x32xf32>
    %458 = arith.mulf %442, %450 : vector<8x32xf32>
    %459 = arith.addf %457, %458 : vector<8x32xf32>
    %460 = math.tanh %459 : vector<8x32xf32>
    %461 = arith.mulf %456, %460 : vector<8x32xf32>
    %c48_114 = arith.constant 48 : index
    %c0_115 = arith.constant 0 : index
    %462 = vector.load %arg16[%c48_114, %c0_115] : memref<64x32xf32, #tpu.memory_space<vmem>>, vector<8x32xf32>
    tpu.vector_store %arg16[%c48_114, %c0_115], %461 {strides = array<i32>} : memref<64x32xf32, #tpu.memory_space<vmem>>, vector<8x32xf32>,
    %463 = vector.extract_strided_slice %255 {offsets = [56, 0], sizes = [8, 128], strides = [1, 1]} : vector<64x128xf32> to vector<8x128xf32>
    %cst_116 = arith.constant dense<0.000000e+00> : vector<8x128xf32>
    %464 = tpu.matmul %461, %251, %cst_116 {dimension_numbers = #tpu.dot_dimension_numbers<[1], [0], [0], [1], [0, 0, 1, 1], [], []>} : vector<8x32xf32>, vector<32x128xf32>, vector<8x128xf32> -> vector<8x128xf32>
    %465 = arith.addf %463, %464 : vector<8x128xf32>
    %466 = vector.extract_strided_slice %465 {offsets = [0, 0], sizes = [8, 32], strides = [1, 1]} : vector<8x128xf32> to vector<8x32xf32>
    %467 = arith.negf %466 : vector<8x32xf32>
    %468 = math.exp %467 : vector<8x32xf32>
    %cst_117 = arith.constant 1.000000e+00 : f32
    %469 = vector.broadcast %cst_117 : f32 to vector<8x32xf32>
    %470 = arith.addf %469, %468 : vector<8x32xf32>
    %471 = arith.divf %469, %470 : vector<8x32xf32>
    %472 = vector.extract_strided_slice %465 {offsets = [0, 32], sizes = [8, 32], strides = [1, 1]} : vector<8x128xf32> to vector<8x32xf32>
    %473 = arith.negf %472 : vector<8x32xf32>
    %474 = math.exp %473 : vector<8x32xf32>
    %cst_118 = arith.constant 1.000000e+00 : f32
    %475 = vector.broadcast %cst_118 : f32 to vector<8x32xf32>
    %476 = arith.addf %475, %474 : vector<8x32xf32>
    %477 = arith.divf %475, %476 : vector<8x32xf32>
    %478 = vector.extract_strided_slice %465 {offsets = [0, 64], sizes = [8, 32], strides = [1, 1]} : vector<8x128xf32> to vector<8x32xf32>
    %479 = math.tanh %478 : vector<8x32xf32>
    %480 = vector.extract_strided_slice %465 {offsets = [0, 96], sizes = [8, 32], strides = [1, 1]} : vector<8x128xf32> to vector<8x32xf32>
    %481 = arith.negf %480 : vector<8x32xf32>
    %482 = math.exp %481 : vector<8x32xf32>
    %cst_119 = arith.constant 1.000000e+00 : f32
    %483 = vector.broadcast %cst_119 : f32 to vector<8x32xf32>
    %484 = arith.addf %483, %482 : vector<8x32xf32>
    %485 = arith.divf %483, %484 : vector<8x32xf32>
    %486 = arith.mulf %477, %459 : vector<8x32xf32>
    %487 = arith.mulf %471, %479 : vector<8x32xf32>
    %488 = arith.addf %486, %487 : vector<8x32xf32>
    %489 = math.tanh %488 : vector<8x32xf32>
    %490 = arith.mulf %485, %489 : vector<8x32xf32>
    %c56_120 = arith.constant 56 : index
    %c0_121 = arith.constant 0 : index
    %491 = vector.load %arg16[%c56_120, %c0_121] : memref<64x32xf32, #tpu.memory_space<vmem>>, vector<8x32xf32>
    tpu.vector_store %arg16[%c56_120, %c0_121], %490 {strides = array<i32>} : memref<64x32xf32, #tpu.memory_space<vmem>>, vector<8x32xf32>,
    %c1_122 = arith.constant 1 : index
    %c0_123 = arith.constant 0 : index
    %c0_124 = arith.constant 0 : index
    %492 = vector.load %arg14[%c1_122, %c0_123, %c0_124] : memref<2x8x32xf32, #tpu.memory_space<vmem>>, vector<1x8x32xf32>
    %493 = vector.shape_cast %492 : vector<1x8x32xf32> to vector<8x32xf32>
    %494 = vector.shape_cast %490 : vector<8x32xf32> to vector<1x8x32xf32>
    tpu.vector_store %arg14[%c1_122, %c0_123, %c0_124], %494 {strides = array<i32>} : memref<2x8x32xf32, #tpu.memory_space<vmem>>, vector<1x8x32xf32>,
    %c1_125 = arith.constant 1 : index
    %c0_126 = arith.constant 0 : index
    %c0_127 = arith.constant 0 : index
    %495 = vector.load %arg15[%c1_125, %c0_126, %c0_127] : memref<2x8x32xf32, #tpu.memory_space<vmem>>, vector<1x8x32xf32>
    %496 = vector.shape_cast %495 : vector<1x8x32xf32> to vector<8x32xf32>
    %497 = vector.shape_cast %488 : vector<8x32xf32> to vector<1x8x32xf32>
    tpu.vector_store %arg15[%c1_125, %c0_126, %c0_127], %497 {strides = array<i32>} : memref<2x8x32xf32, #tpu.memory_space<vmem>>, vector<1x8x32xf32>,
    %c0_128 = arith.constant 0 : index
    %c0_129 = arith.constant 0 : index
    %498 = vector.load %arg16[%c0_128, %c0_129] : memref<64x32xf32, #tpu.memory_space<vmem>>, vector<64x32xf32>
    %c0_130 = arith.constant 0 : index
    %c0_131 = arith.constant 0 : index
    %499 = vector.load %arg9[%c0_130, %c0_131] : memref<32x256xf32, #tpu.memory_space<vmem>>, vector<32x256xf32>
    %cst_132 = arith.constant dense<0.000000e+00> : vector<64x256xf32>
    %500 = tpu.matmul %498, %499, %cst_132 {dimension_numbers = #tpu.dot_dimension_numbers<[1], [0], [0], [1], [0, 0, 1, 1], [], []>} : vector<64x32xf32>, vector<32x256xf32>, vector<64x256xf32> -> vector<64x256xf32>
    %c0_133 = arith.constant 0 : index
    %c0_134 = arith.constant 0 : index
    %501 = vector.load %arg10[%c0_133, %c0_134] : memref<1x256xf32, #tpu.memory_space<vmem>>, vector<1x256xf32>
    %502 = vector.broadcast %501 : vector<1x256xf32> to vector<64x256xf32>
    %503 = arith.addf %500, %502 : vector<64x256xf32>
    %c0_135 = arith.constant 0 : index
    %c0_136 = arith.constant 0 : index
    %504 = vector.load %arg11[%c0_135, %c0_136] : memref<256x128xf32, #tpu.memory_space<vmem>>, vector<256x128xf32>
    %cst_137 = arith.constant dense<0.000000e+00> : vector<64x128xf32>
    %505 = tpu.matmul %503, %504, %cst_137 {dimension_numbers = #tpu.dot_dimension_numbers<[1], [0], [0], [1], [0, 0, 1, 1], [], []>} : vector<64x256xf32>, vector<256x128xf32>, vector<64x128xf32> -> vector<64x128xf32>
    %c0_138 = arith.constant 0 : index
    %c0_139 = arith.constant 0 : index
    %506 = vector.load %arg12[%c0_138, %c0_139] : memref<1x128xf32, #tpu.memory_space<vmem>>, vector<1x128xf32>
    %507 = vector.broadcast %506 : vector<1x128xf32> to vector<64x128xf32>
    %508 = arith.addf %505, %507 : vector<64x128xf32>
    %cst_140 = arith.constant 0.000000e+00 : f32
    %509 = vector.broadcast %cst_140 : f32 to vector<64x128xf32>
    %510 = arith.maximumf %508, %509 : vector<64x128xf32>
    %511 = tpu.iota {dimensions = array<i32: 1>} : vector<64x128xi32>
    %c64_i32 = arith.constant 64 : i32
    %512 = vector.broadcast %c64_i32 : i32 to vector<64x128xi32>
    %513 = arith.cmpi slt, %511, %512 : vector<64x128xi32>
    %cst_141 = arith.constant -1.000000e+30 : f32
    %514 = vector.broadcast %cst_141 : f32 to vector<64x128xf32>
    %515 = arith.select %513, %510, %514 : vector<64x128xi1>, vector<64x128xf32>
    %cst_142 = arith.constant dense<0xFF800000> : vector<64xf32>
    %516 = vector.multi_reduction <maximumf>, %515, %cst_142 [1] : vector<64x128xf32> to vector<64xf32>
    %517 = vector.shape_cast %516 : vector<64xf32> to vector<64x1xf32>
    %518 = vector.broadcast %517 : vector<64x1xf32> to vector<64x128xf32>
    %519 = arith.subf %515, %518 : vector<64x128xf32>
    %520 = math.exp %519 : vector<64x128xf32>
    %cst_143 = arith.constant dense<0.000000e+00> : vector<64xf32>
    %521 = vector.multi_reduction <add>, %520, %cst_143 [1] : vector<64x128xf32> to vector<64xf32>
    %522 = vector.shape_cast %521 : vector<64xf32> to vector<64x1xf32>
    %523 = math.log %522 : vector<64x1xf32>
    %524 = arith.addf %523, %517 : vector<64x1xf32>
    %525 = vector.broadcast %524 : vector<64x1xf32> to vector<64x128xf32>
    %526 = arith.subf %515, %525 : vector<64x128xf32>
    %c0_144 = arith.constant 0 : index
    %c0_145 = arith.constant 0 : index
    %527 = vector.load %arg13[%c0_144, %c0_145] : memref<64x128xf32, #tpu.memory_space<vmem>>, vector<64x128xf32>
    tpu.vector_store %arg13[%c0_144, %c0_145], %526 {strides = array<i32>} : memref<64x128xf32, #tpu.memory_space<vmem>>, vector<64x128xf32>,
    return
  }
}

</mosaic_0001>

<bundles_post_ra>
// kernel: forward.1
= control target key start
LH: loop header
LB: loop body
LE: loop exit
PB: predicated region body
PF: predicated region fallthrough
CT: control target
= control target key end

     0   :  { %vm65_vm0 = vcmask 130048   ;;  %vm133_vm1 = vcmask 261120   ;;  %s1896_s19 = smov 64   ;;  %s1897_s22 = smov 32   ;;  %s2621_s4 = inlined_call_operand.vmem [shape: f32[32,128], index: 4, kind: input, shape index: {}]   ;;  %s2622_s3 = inlined_call_operand.vmem [shape: f32[16,128], index: 3, kind: input, shape index: {}]   ;;  %s2623_s0 = inlined_call_operand.vmem [shape: f32[64,16], index: 0, kind: input, shape index: {}]   ;;  %s2624_s1 = inlined_call_operand.vmem [shape: f32[2,8,32], index: 1, kind: input, shape index: {}, may-alias: {1,2}]   ;;  %s2625_s5 = inlined_call_operand.vmem [shape: f32[1,128], index: 5, kind: input, shape index: {}]   ;;  %s2626_s2 = inlined_call_operand.vmem [shape: f32[2,8,32], index: 2, kind: input, shape index: {}, may-alias: {1,2}]   ;;  %s2627_s6 = inlined_call_operand.vmem [shape: f32[32,128], index: 6, kind: input, shape index: {}]   ;;  %s2628_s8 = inlined_call_operand.vmem [shape: f32[1,128], index: 8, kind: input, shape index: {}]   ;;  %s2629_s7 = inlined_call_operand.vmem [shape: f32[32,128], index: 7, kind: input, shape index: {}]   ;;  %s2630_s9 = inlined_call_operand.vmem [shape: f32[32,256], index: 9, kind: input, shape index: {}]   ;;  %s2631_s11 = inlined_call_operand.vmem [shape: f32[256,128], index: 11, kind: input, shape index: {}]   ;;  %s2632_s10 = inlined_call_operand.vmem [shape: f32[1,256], index: 10, kind: input, shape index: {}]   ;;  %s2633_s12 = inlined_call_operand.vmem [shape: f32[1,128], index: 12, kind: input, shape index: {}]   ;;  %s2634_s14 = inlined_call_operand.vmem [shape: f32[2,8,32], index: 14, kind: output, shape index: {1}]   ;;  %s2635_s13 = inlined_call_operand.vmem [shape: f32[64,128], index: 13, kind: output, shape index: {0}]   ;;  %s2636_s15 = inlined_call_operand.vmem [shape: f32[2,8,32], index: 15, kind: output, shape index: {2}]  }
   0x1   :  { %v1982_v0 = vld [vmem:[%s2621_s4 + $0x18] sm:$0xff]  ;;  %v56_v1 = vld [vmem:[%s2622_s3 + $0x8] sm:$0xff]  ;;  %v1990_v2 = vld [vmem:[%s2621_s4 + $0x10] sm:$0xff]  ;;  %s1898_s25 = smov 96  }
   0x2   :  { %149 = vmatpush.msra.mxu1 %v1982_v0  ;;  %104 = vmatpush.msra.mxu0 %v56_v1  ;;  %v55_v3 = vld [vmem:[%s2622_s3] sm:$0xff]  ;;  %v2002_v5 = vld [vmem:[%s2621_s4 + $0x8] sm:$0xff]  ;;  %v676_v37 = vld [vmem:[%s2627_s6 + $0x18] sm:$0xff] }
   0x3   :  { %v47_v4 = vld [vmem:[%s2623_s0] sm:$0xff]  ;;  %218 = vmatpush.msra.mxu2 %v1982_v0  ;;  %v675_v38 = vld [vmem:[%s2627_s6 + $0x10] sm:$0xff]  ;;  %v48_v39 = vld [vmem:[%s2623_s0 + $0x8] sm:$0xff]  ;;  %721 = vmatpush.msra.mxu3 %v676_v37 }
   0x4   :  { %150 = vmatpush.msra.mxu1 %v1990_v2  ;;  %105 = vmatpush.msra.mxu0 %v55_v3  ;;  %v2010_v6 = vld [vmem:[%s2621_s4] sm:$0xff]  ;;  %v674_v40 = vld [vmem:[%s2627_s6 + $0x8] sm:$0xff] }
   0x5   :  { %1660 = vmatmul.msk.f32.vlgmr.msra.gmra.mxu0 %vm65_vm0, %v47_v4  ;;  %219 = vmatpush.msra.mxu2 %v1990_v2  ;;  %v131_v7 = vld [vmem:[%s2624_s1] sm:$0xff] }
   0x6   :  { %151 = vmatpush.msra.mxu1 %v2002_v5  ;;  %v2036_v8 = vld [vmem:[%s2625_s5] ss:$0 sm:$0xff]  ;;  %722 = vmatpush.msra.mxu3 %v675_v38  ;;  %v50_v38 = vld [vmem:[%s2623_s0 + $0x18] sm:$0xff] }
   0x7   :  { %220 = vmatpush.msra.mxu2 %v2002_v5  ;;  %v132_v14 = vld [vmem:[%s2626_s2] sm:$0xff] }
   0x8   :  { %152 = vmatpush.msra.mxu1 %v2010_v6  ;;  %v673_v41 = vld [vmem:[%s2627_s6] sm:$0xff]  ;;  %723 = vmatpush.msra.mxu3 %v674_v40 }
   0x9   :  { %1668 = vmatmul.msk.f32.vlgmr.msra.gmra.mxu1 %vm133_vm1, %v131_v7  ;;  %221 = vmatpush.msra.mxu2 %v2010_v6 }
   0xa   :  { %283 = vmatpush.msrb.mxu1 %v1982_v0  ;;  %724 = vmatpush.msra.mxu3 %v673_v41 }
   0xb   :  { %413 = vmatpush.msrb.mxu2 %v1982_v0 }
   0xc   :  { %284 = vmatpush.msrb.mxu1 %v1990_v2 }
   0xd   :  { %414 = vmatpush.msrb.mxu2 %v1990_v2  ;;  %1661 = vmatmul.msk.f32.gmra.mxu0 %vm65_vm0, %v48_v39 }
   0xe   :  { %285 = vmatpush.msrb.mxu1 %v2002_v5 }
   0xf   :  { %415 = vmatpush.msrb.mxu2 %v2002_v5 }
  0x10   :  { %286 = vmatpush.msrb.mxu1 %v2010_v6 }
  0x11   :  { %416 = vmatpush.msrb.mxu2 %v2010_v6 }
  0x12   :  { %348 = vmatpush.msra.mxu1 %v1982_v0 }
  0x14   :  { %349 = vmatpush.msra.mxu1 %v1990_v2 }
  0x16   :  { %350 = vmatpush.msra.mxu1 %v2002_v5 }
  0x18   :  { %351 = vmatpush.msra.mxu1 %v2010_v6 }
  0x82   :  { %v107_v9 = vpop.f32.mrf.mxu0 }
  0x83   :  { %v108_v10 = vadd.f32 %v2036_v8, %v107_v9  ;;  %v49_v9 = vld [vmem:[%s2623_s0 + $0x10] sm:$0xff] }
  0x84   :  { %1662 = vmatmul.msk.f32.gmra.mxu0 %vm65_vm0, %v49_v9 }
  0x86   :  { %v154_v11 = vpop.f32.mrf.mxu1 }
  0x87   :  { %v157_v12 = vadd.f32 %v154_v11, %v108_v10 }
  0x89   :  { %1734 = vtanh.f32 %v157_v12  ;;  %v1669_v15 = vmul.f32 -1.442695, %v157_v12 }
  0x8a   :  { %v110_v44 = vpop.f32.mrf.mxu0 }
  0x8b   :  { %1736 = vpow2.f32 %v1669_v15  ;;  %v111_v45 = vadd.f32 %v2036_v8, %v110_v44 }
  0x8c   :  { %1663 = vmatmul.msk.f32.gmra.mxu0 %vm65_vm0, %v50_v38 }
  0x8f   :  { %v1735_v13 = vpop.eup %1734 }
  0x90   :  { %184 = vrot.lane.b32.xlu0 %v1735_v13, %s1896_s19 }
  0x91   :  { %v1737_v16 = vpop.eup %1736 }
  0x92   :  { %v161_v17 = vadd.f32 1.0, %v1737_v16 }
  0x94   :  { %1738 = vrcp.f32 %v161_v17  ;;  %v173_v23 = vand.u32 2147483648, %v161_v17  ;;  %vm167_vm3 = vweird.f32 %v161_v17  ;;  %v171_v24 = vand.u32 2147483647, %v161_v17 }
  0x96   :  { %v174_v26 = vor.u32 1.1754944e-38, %v173_v23  ;;  %vm172_vm5 = vcmp.eq.f32.partialorder %v171_v24, 8.507059e+37 }
  0x98   :  { %179 = vrot.lane.b32.xlu0 %v132_v14, %s1897_s22 }
  0x9a   :  { %v1739_v18 = vpop.eup %1738 }
  0x9b   :  { %v163_v19 = vmul.f32 %v1739_v18, %v161_v17  ;;  %vm168_vm2 = vweird.f32 %v1739_v18 }
  0x9c   :  { %vm169_vm4 = vmor %vm167_vm3, %vm168_vm2 }
  0x9d   :  { %v164_v20 = vsub.f32 1.0, %v163_v19 }
  0x9f   :  { %v165_v21 = vmul.f32 %v1739_v18, %v164_v20 }
  0xa1   :  { %v166_v22 = vadd.f32 %v1739_v18, %v165_v21 }
  0xa3   :  { %v170_v25 = vsel %vm169_vm4, %v1739_v18, %v166_v22 }
  0xa4   :  { %v175_v28 = vsel %vm172_vm5, %v174_v26, %v170_v25 }
 0x101   :  { %v113_v14 = vpop.f32.mrf.mxu0 }
 0x102   :  { %v185_v27 = vpop.permute.xlu0 %184  ;;  %v114_v15 = vadd.f32 %v2036_v8, %v113_v14 }
 0x103   :  { %v187_v29 = vmul.f32 %v185_v27, %v175_v28 }
 0x105   :  { %189 = vrot.lane.b32.xlu1 %v187_v29, %s1897_s22 }
 0x10a   :  { %v180_v30 = vpop.permute.xlu0 %179 }
 0x10b   :  { %v182_v31 = vmul.f32 %v180_v30, %v175_v28 }
 0x177   :  { %v190_v32 = vpop.permute.xlu1 %189 }
 0x178   :  { %v192_v33 = vadd.f32 %v190_v32, %v182_v31 }
 0x17a   :  { %1740 = vtanh.f32 %v192_v33 }
 0x180   :  { %v1741_v34 = vpop.eup %1740 }
 0x181   :  { %195 = vrot.lane.b32.xlu1 %v1741_v34, %s1896_s19 }
 0x1f3   :  { %v196_v35 = vpop.permute.xlu1 %195 }
 0x1f4   :  { %v198_v36 = vmul.f32 %v196_v35, %v175_v28 }
 0x1f6   :  { %200 = vrot.lane.b32.xlu2 %v198_v36, %s1897_s22 }
 0x250   :  { %v201_v42 = vpop.permute.xlu2 %200 }
 0x251   :  { %203 = vst.msk [vmem:[#allocation2] sm:$0xff] %vm133_vm1, %v201_v42  ;;  %1670 = vmatmul.msk.f32.vlgmr.msra.gmra.mxu2 %vm133_vm1, %v201_v42 }
 0x252   :  { %478 = vmatpush.msra.mxu2 %v1982_v0 }
 0x254   :  { %479 = vmatpush.msra.mxu2 %v1990_v2 }
 0x256   :  { %480 = vmatpush.msra.mxu2 %v2002_v5 }
 0x258   :  { %v665_v43 = vld [vmem:[#allocation2] sm:$0xff]  ;;  %481 = vmatpush.msra.mxu2 %v2010_v6 }
 0x259   :  { %1684 = vmatmul.msk.f32.vlgmr.msra.gmra.mxu3 %vm133_vm1, %v665_v43  ;;  %v116_v43 = vpop.f32.mrf.mxu0 }
 0x25a   :  { %v117_v44 = vadd.f32 %v2036_v8, %v116_v43 }
 0x2d4   :  { %v223_v46 = vpop.f32.mrf.mxu2 }
 0x2d5   :  { %v226_v47 = vadd.f32 %v223_v46, %v111_v45 }
 0x2d7   :  { %1742 = vtanh.f32 %v226_v47  ;;  %v1671_v49 = vmul.f32 -1.442695, %v226_v47 }
 0x2d9   :  { %1744 = vpow2.f32 %v1671_v49 }
 0x2dd   :  { %v1743_v48 = vpop.eup %1742 }
 0x2de   :  { %249 = vrot.lane.b32.xlu2 %v1743_v48, %s1896_s19 }
 0x2df   :  { %v1745_v50 = vpop.eup %1744 }
 0x2e0   :  { %v230_v51 = vadd.f32 1.0, %v1745_v50 }
 0x2e2   :  { %1746 = vrcp.f32 %v230_v51  ;;  %v242_v57 = vand.u32 2147483648, %v230_v51  ;;  %vm236_vm7 = vweird.f32 %v230_v51  ;;  %v240_v58 = vand.u32 2147483647, %v230_v51 }
 0x2e4   :  { %v243_v60 = vor.u32 1.1754944e-38, %v242_v57  ;;  %vm241_vm9 = vcmp.eq.f32.partialorder %v240_v58, 8.507059e+37 }
 0x2e8   :  { %v1747_v52 = vpop.eup %1746 }
 0x2e9   :  { %v232_v53 = vmul.f32 %v1747_v52, %v230_v51  ;;  %vm237_vm6 = vweird.f32 %v1747_v52 }
 0x2ea   :  { %vm238_vm8 = vmor %vm236_vm7, %vm237_vm6 }
 0x2eb   :  { %v233_v54 = vsub.f32 1.0, %v232_v53 }
 0x2ed   :  { %v234_v55 = vmul.f32 %v1747_v52, %v233_v54 }
 0x2ef   :  { %v235_v56 = vadd.f32 %v1747_v52, %v234_v55 }
 0x2f1   :  { %v239_v59 = vsel %vm238_vm8, %v1747_v52, %v235_v56 }
 0x2f2   :  { %v244_v62 = vsel %vm241_vm9, %v243_v60, %v239_v59 }
 0x2f3   :  { %v247_v1 = vmul.f32 %v244_v62, %v192_v33 }
 0x338   :  { %v250_v61 = vpop.permute.xlu2 %249 }
 0x339   :  { %v252_v63 = vmul.f32 %v250_v61, %v244_v62 }
 0x33b   :  { %254 = vrot.lane.b32.xlu0 %v252_v63, %s1897_s22 }
 0x3ad   :  { %v255_v3 = vpop.permute.xlu0 %254 }
 0x3ae   :  { %v257_v4 = vadd.f32 %v255_v3, %v247_v1 }
 0x3b0   :  { %1748 = vtanh.f32 %v257_v4 }
 0x3b6   :  { %v1749_v7 = vpop.eup %1748 }
 0x3b7   :  { %260 = vrot.lane.b32.xlu1 %v1749_v7, %s1896_s19 }
 0x429   :  { %v261_v10 = vpop.permute.xlu1 %260 }
 0x42a   :  { %v263_v11 = vmul.f32 %v261_v10, %v244_v62  ;;  %v51_v10 = vld [vmem:[%s2623_s0 + $0x20] sm:$0xff] }
 0x42b   :  { %1664 = vmatmul.msk.f32.gmra.mxu0 %vm65_vm0, %v51_v10 }
 0x42c   :  { %265 = vrot.lane.b32.xlu2 %v263_v11, %s1897_s22 }
 0x486   :  { %v266_v12 = vpop.permute.xlu2 %265 }
 0x487   :  { %268 = vst.msk [vmem:[#allocation2 + $0x8] sm:$0xff] %vm133_vm1, %v266_v12  ;;  %1672 = vmatmul.msk.f32.vlgmr.msrb.gmra.mxu1 %vm133_vm1, %v266_v12 }
 0x488   :  { %543 = vmatpush.msrb.mxu1 %v1982_v0 }
 0x48a   :  { %544 = vmatpush.msrb.mxu1 %v1990_v2 }
 0x48c   :  { %545 = vmatpush.msrb.mxu1 %v2002_v5 }
 0x48e   :  { %v666_v13 = vld [vmem:[#allocation2 + $0x8] sm:$0xff]  ;;  %546 = vmatpush.msrb.mxu1 %v2010_v6 }
 0x48f   :  { %1685 = vmatmul.msk.f32.gmra.mxu3 %vm133_vm1, %v666_v13 }
 0x4a8   :  { %v119_v13 = vpop.f32.mrf.mxu0 }
 0x4a9   :  { %v120_v14 = vadd.f32 %v2036_v8, %v119_v13 }
 0x504   :  { %v288_v16 = vpop.f32.mrf.mxu1 }
 0x505   :  { %v291_v17 = vadd.f32 %v288_v16, %v114_v15 }
 0x507   :  { %1750 = vtanh.f32 %v291_v17  ;;  %v1673_v19 = vmul.f32 -1.442695, %v291_v17 }
 0x509   :  { %1752 = vpow2.f32 %v1673_v19 }
 0x50d   :  { %v1751_v18 = vpop.eup %1750 }
 0x50e   :  { %314 = vrot.lane.b32.xlu0 %v1751_v18, %s1896_s19 }
 0x50f   :  { %v1753_v20 = vpop.eup %1752 }
 0x510   :  { %v295_v21 = vadd.f32 1.0, %v1753_v20 }
 0x512   :  { %1754 = vrcp.f32 %v295_v21  ;;  %v307_v27 = vand.u32 2147483648, %v295_v21  ;;  %vm301_vm11 = vweird.f32 %v295_v21  ;;  %v305_v28 = vand.u32 2147483647, %v295_v21 }
 0x514   :  { %v308_v30 = vor.u32 1.1754944e-38, %v307_v27  ;;  %vm306_vm13 = vcmp.eq.f32.partialorder %v305_v28, 8.507059e+37 }
 0x518   :  { %v1755_v22 = vpop.eup %1754 }
 0x519   :  { %v297_v23 = vmul.f32 %v1755_v22, %v295_v21  ;;  %vm302_vm10 = vweird.f32 %v1755_v22 }
 0x51a   :  { %vm303_vm12 = vmor %vm301_vm11, %vm302_vm10 }
 0x51b   :  { %v298_v24 = vsub.f32 1.0, %v297_v23 }
 0x51d   :  { %v299_v25 = vmul.f32 %v1755_v22, %v298_v24 }
 0x51f   :  { %v300_v26 = vadd.f32 %v1755_v22, %v299_v25 }
 0x521   :  { %v304_v29 = vsel %vm303_vm12, %v1755_v22, %v300_v26 }
 0x522   :  { %v309_v32 = vsel %vm306_vm13, %v308_v30, %v304_v29 }
 0x523   :  { %v312_v34 = vmul.f32 %v309_v32, %v257_v4 }
 0x580   :  { %v315_v31 = vpop.permute.xlu0 %314 }
 0x581   :  { %v317_v33 = vmul.f32 %v315_v31, %v309_v32 }
 0x583   :  { %319 = vrot.lane.b32.xlu1 %v317_v33, %s1897_s22 }
 0x5f5   :  { %v320_v35 = vpop.permute.xlu1 %319 }
 0x5f6   :  { %v322_v36 = vadd.f32 %v320_v35, %v312_v34  ;;  %v52_v35 = vld [vmem:[%s2623_s0 + $0x28] sm:$0xff] }
 0x5f7   :  { %1665 = vmatmul.msk.f32.gmra.mxu0 %vm65_vm0, %v52_v35 }
 0x5f8   :  { %1756 = vtanh.f32 %v322_v36 }
 0x5fe   :  { %v1757_v37 = vpop.eup %1756 }
 0x5ff   :  { %325 = vrot.lane.b32.xlu2 %v1757_v37, %s1896_s19 }
 0x659   :  { %v326_v39 = vpop.permute.xlu2 %325 }
 0x65a   :  { %v328_v40 = vmul.f32 %v326_v39, %v309_v32 }
 0x65c   :  { %330 = vrot.lane.b32.xlu0 %v328_v40, %s1897_s22 }
 0x674   :  { %v122_v38 = vpop.f32.mrf.mxu0 }
 0x675   :  { %v123_v39 = vadd.f32 %v2036_v8, %v122_v38 }
 0x6ce   :  { %v331_v41 = vpop.permute.xlu0 %330 }
 0x6cf   :  { %333 = vst.msk [vmem:[#allocation2 + $0x10] sm:$0xff] %vm133_vm1, %v331_v41  ;;  %1674 = vmatmul.msk.f32.vlgmr.msra.gmra.mxu1 %vm133_vm1, %v331_v41 }
 0x6d6   :  { %v667_v42 = vld [vmem:[#allocation2 + $0x10] sm:$0xff] }
 0x6d7   :  { %1686 = vmatmul.msk.f32.gmra.mxu3 %vm133_vm1, %v667_v42 }
 0x74c   :  { %v353_v45 = vpop.f32.mrf.mxu1 }
 0x74d   :  { %v356_v46 = vadd.f32 %v353_v45, %v117_v44 }
 0x74f   :  { %1758 = vtanh.f32 %v356_v46  ;;  %v1675_v48 = vmul.f32 -1.442695, %v356_v46 }
 0x751   :  { %1760 = vpow2.f32 %v1675_v48 }
 0x755   :  { %v1759_v47 = vpop.eup %1758 }
 0x756   :  { %379 = vrot.lane.b32.xlu1 %v1759_v47, %s1896_s19 }
 0x757   :  { %v1761_v49 = vpop.eup %1760 }
 0x758   :  { %v360_v50 = vadd.f32 1.0, %v1761_v49 }
 0x75a   :  { %1762 = vrcp.f32 %v360_v50  ;;  %v372_v56 = vand.u32 2147483648, %v360_v50  ;;  %vm366_vm15 = vweird.f32 %v360_v50  ;;  %v370_v57 = vand.u32 2147483647, %v360_v50 }
 0x75c   :  { %v373_v59 = vor.u32 1.1754944e-38, %v372_v56  ;;  %vm371_vm3 = vcmp.eq.f32.partialorder %v370_v57, 8.507059e+37 }
 0x760   :  { %v1763_v51 = vpop.eup %1762 }
 0x761   :  { %v362_v52 = vmul.f32 %v1763_v51, %v360_v50  ;;  %vm367_vm14 = vweird.f32 %v1763_v51 }
 0x762   :  { %vm368_vm2 = vmor %vm366_vm15, %vm367_vm14 }
 0x763   :  { %v363_v53 = vsub.f32 1.0, %v362_v52 }
 0x765   :  { %v364_v54 = vmul.f32 %v1763_v51, %v363_v53 }
 0x767   :  { %v365_v55 = vadd.f32 %v1763_v51, %v364_v54 }
 0x769   :  { %v369_v58 = vsel %vm368_vm2, %v1763_v51, %v365_v55 }
 0x76a   :  { %v374_v61 = vsel %vm371_vm3, %v373_v59, %v369_v58 }
 0x76b   :  { %v377_v63 = vmul.f32 %v374_v61, %v322_v36 }
 0x7c8   :  { %v380_v60 = vpop.permute.xlu1 %379 }
 0x7c9   :  { %v382_v62 = vmul.f32 %v380_v60, %v374_v61 }
 0x7cb   :  { %384 = vrot.lane.b32.xlu2 %v382_v62, %s1897_s22  ;;  %v53_v62 = vld [vmem:[%s2623_s0 + $0x30] sm:$0xff] }
 0x7cc   :  { %1666 = vmatmul.msk.f32.gmra.mxu0 %vm65_vm0, %v53_v62 }
 0x825   :  { %v385_v1 = vpop.permute.xlu2 %384 }
 0x826   :  { %v387_v3 = vadd.f32 %v385_v1, %v377_v63 }
 0x828   :  { %1764 = vtanh.f32 %v387_v3 }
 0x82e   :  { %v1765_v4 = vpop.eup %1764 }
 0x82f   :  { %390 = vrot.lane.b32.xlu0 %v1765_v4, %s1896_s19  ;;  %v2146_v4 = vld [vmem:[%s2629_s7 + $0x10] sm:$0xff] }
 0x849   :  { %v125_v13 = vpop.f32.mrf.mxu0 }
 0x8a1   :  { %v391_v7 = vpop.permute.xlu0 %390 }
 0x8a2   :  { %v393_v9 = vmul.f32 %v391_v7, %v374_v61  ;;  %v2153_v7 = vld [vmem:[%s2629_s7 + $0x8] sm:$0xff] }
 0x8a4   :  { %395 = vrot.lane.b32.xlu1 %v393_v9, %s1897_s22  ;;  %v2160_v9 = vld [vmem:[%s2629_s7] sm:$0xff] }
 0x916   :  { %v396_v11 = vpop.permute.xlu1 %395 }
 0x917   :  { %398 = vst.msk [vmem:[#allocation2 + $0x18] sm:$0xff] %vm133_vm1, %v396_v11  ;;  %1676 = vmatmul.msk.f32.vlgmr.msrb.gmra.mxu2 %vm133_vm1, %v396_v11  ;;  %v1692_v11 = vld [vmem:[%s2624_s1 + $0x8] sm:$0xff] }
 0x918   :  { %608 = vmatpush.msrb.mxu2 %v1982_v0 }
 0x91a   :  { %609 = vmatpush.msrb.mxu2 %v1990_v2 }
 0x91c   :  { %610 = vmatpush.msrb.mxu2 %v2002_v5 }
 0x91e   :  { %v668_v12 = vld [vmem:[#allocation2 + $0x18] sm:$0xff]  ;;  %611 = vmatpush.msrb.mxu2 %v2010_v6 }
 0x91f   :  { %1687 = vmatmul.msk.f32.gmra.mxu3 %vm133_vm1, %v668_v12 }
 0x99a   :  { %v418_v15 = vpop.f32.mrf.mxu2 }
 0x99b   :  { %v421_v16 = vadd.f32 %v418_v15, %v120_v14  ;;  %v126_v14 = vadd.f32 %v2036_v8, %v125_v13  ;;  %v1693_v8 = vld [vmem:[%s2626_s2 + $0x8] sm:$0xff] }
 0x99d   :  { %1766 = vtanh.f32 %v421_v16  ;;  %v1677_v18 = vmul.f32 -1.442695, %v421_v16 }
 0x99f   :  { %1768 = vpow2.f32 %v1677_v18  ;;  %v726_v18 = vpop.f32.mrf.mxu3 }
 0x9a3   :  { %v1767_v17 = vpop.eup %1766 }
 0x9a4   :  { %444 = vrot.lane.b32.xlu2 %v1767_v17, %s1896_s19  ;;  %v2185_v17 = vld [vmem:[%s2628_s8] ss:$0 sm:$0xff] }
 0x9a5   :  { %v1769_v0 = vpop.eup %1768 }
 0x9a6   :  { %v425_v2 = vadd.f32 1.0, %v1769_v0  ;;  %v727_v0 = vadd.f32 %v2185_v17, %v726_v18 }
 0x9a7   :  { %v729_v13 = vpop.f32.mrf.mxu3 }
 0x9a8   :  { %1770 = vrcp.f32 %v425_v2  ;;  %v437_v22 = vand.u32 2147483648, %v425_v2  ;;  %vm431_vm5 = vweird.f32 %v425_v2  ;;  %v435_v23 = vand.u32 2147483647, %v425_v2 }
 0x9aa   :  { %v438_v25 = vor.u32 1.1754944e-38, %v437_v22  ;;  %vm436_vm7 = vcmp.eq.f32.partialorder %v435_v23, 8.507059e+37 }
 0x9ae   :  { %v1771_v5 = vpop.eup %1770 }
 0x9af   :  { %v427_v19 = vmul.f32 %v1771_v5, %v425_v2  ;;  %vm432_vm4 = vweird.f32 %v1771_v5 }
 0x9b0   :  { %vm433_vm6 = vmor %vm431_vm5, %vm432_vm4 }
 0x9b1   :  { %v428_v20 = vsub.f32 1.0, %v427_v19 }
 0x9b3   :  { %v429_v6 = vmul.f32 %v1771_v5, %v428_v20 }
 0x9b5   :  { %v430_v21 = vadd.f32 %v1771_v5, %v429_v6 }
 0x9b7   :  { %v434_v24 = vsel %vm433_vm6, %v1771_v5, %v430_v21 }
 0x9b8   :  { %v439_v27 = vsel %vm436_vm7, %v438_v25, %v434_v24 }
 0x9b9   :  { %v442_v29 = vmul.f32 %v439_v27, %v387_v3  ;;  %v2141_v3 = vld [vmem:[%s2629_s7 + $0x18] sm:$0xff] }
 0x9ba   :  { %769 = vmatpush.msra.mxu1 %v2141_v3 }
 0x9bc   :  { %770 = vmatpush.msra.mxu1 %v2146_v4 }
 0x9be   :  { %771 = vmatpush.msra.mxu1 %v2153_v7 }
 0x9c0   :  { %772 = vmatpush.msra.mxu1 %v2160_v9 }
 0x9fe   :  { %v445_v26 = vpop.permute.xlu2 %444 }
 0x9ff   :  { %v447_v28 = vmul.f32 %v445_v26, %v439_v27 }
 0xa01   :  { %449 = vrot.lane.b32.xlu0 %v447_v28, %s1897_s22 }
 0xa73   :  { %v450_v30 = vpop.permute.xlu0 %449 }
 0xa74   :  { %v452_v31 = vadd.f32 %v450_v30, %v442_v29 }
 0xa76   :  { %1772 = vtanh.f32 %v452_v31 }
 0xa7c   :  { %v1773_v32 = vpop.eup %1772 }
 0xa7d   :  { %455 = vrot.lane.b32.xlu1 %v1773_v32, %s1896_s19 }
 0xaef   :  { %v456_v33 = vpop.permute.xlu1 %455 }
 0xaf0   :  { %v458_v34 = vmul.f32 %v456_v33, %v439_v27 }
 0xaf2   :  { %460 = vrot.lane.b32.xlu2 %v458_v34, %s1897_s22 }
 0xb4c   :  { %v461_v36 = vpop.permute.xlu2 %460 }
 0xb4d   :  { %463 = vst.msk [vmem:[#allocation2 + $0x20] sm:$0xff] %vm133_vm1, %v461_v36  ;;  %1678 = vmatmul.msk.f32.vlgmr.msra.gmra.mxu2 %vm133_vm1, %v461_v36 }
 0xb4e   :  { %838 = vmatpush.msra.mxu2 %v2141_v3 }
 0xb50   :  { %839 = vmatpush.msra.mxu2 %v2146_v4 }
 0xb52   :  { %840 = vmatpush.msra.mxu2 %v2153_v7 }
 0xb54   :  { %v669_v37 = vld [vmem:[#allocation2 + $0x20] sm:$0xff]  ;;  %841 = vmatpush.msra.mxu2 %v2160_v9 }
 0xb55   :  { %1688 = vmatmul.msk.f32.gmra.mxu3 %vm133_vm1, %v669_v37 }
 0xbd0   :  { %v483_v40 = vpop.f32.mrf.mxu2 }
 0xbd1   :  { %v486_v41 = vadd.f32 %v483_v40, %v123_v39 }
 0xbd3   :  { %1774 = vtanh.f32 %v486_v41  ;;  %v1679_v43 = vmul.f32 -1.442695, %v486_v41 }
 0xbd5   :  { %1776 = vpow2.f32 %v1679_v43 }
 0xbd9   :  { %v1775_v42 = vpop.eup %1774 }
 0xbda   :  { %509 = vrot.lane.b32.xlu0 %v1775_v42, %s1896_s19 }
 0xbdb   :  { %v1777_v44 = vpop.eup %1776 }
 0xbdc   :  { %v490_v45 = vadd.f32 1.0, %v1777_v44 }
 0xbde   :  { %1778 = vrcp.f32 %v490_v45  ;;  %v502_v51 = vand.u32 2147483648, %v490_v45  ;;  %vm496_vm9 = vweird.f32 %v490_v45  ;;  %v500_v52 = vand.u32 2147483647, %v490_v45 }
 0xbe0   :  { %v503_v54 = vor.u32 1.1754944e-38, %v502_v51  ;;  %vm501_vm11 = vcmp.eq.f32.partialorder %v500_v52, 8.507059e+37 }
 0xbe4   :  { %v1779_v46 = vpop.eup %1778 }
 0xbe5   :  { %v492_v47 = vmul.f32 %v1779_v46, %v490_v45  ;;  %vm497_vm8 = vweird.f32 %v1779_v46 }
 0xbe6   :  { %vm498_vm10 = vmor %vm496_vm9, %vm497_vm8 }
 0xbe7   :  { %v493_v48 = vsub.f32 1.0, %v492_v47 }
 0xbe9   :  { %v494_v49 = vmul.f32 %v1779_v46, %v493_v48 }
 0xbeb   :  { %v495_v50 = vadd.f32 %v1779_v46, %v494_v49 }
 0xbed   :  { %v499_v53 = vsel %vm498_vm10, %v1779_v46, %v495_v50 }
 0xbee   :  { %v504_v56 = vsel %vm501_vm11, %v503_v54, %v499_v53 }
 0xbef   :  { %v507_v58 = vmul.f32 %v504_v56, %v452_v31 }
 0xc4c   :  { %v510_v55 = vpop.permute.xlu0 %509 }
 0xc4d   :  { %v512_v57 = vmul.f32 %v510_v55, %v504_v56 }
 0xc4f   :  { %514 = vrot.lane.b32.xlu1 %v512_v57, %s1897_s22 }
 0xcc1   :  { %v515_v59 = vpop.permute.xlu1 %514 }
 0xcc2   :  { %v2129_v60 = vadd.f32 %v515_v59, %v507_v58 }
 0xcc4   :  { %1780 = vtanh.f32 %v2129_v60 }
 0xcca   :  { %v1781_v61 = vpop.eup %1780 }
 0xccb   :  { %520 = vrot.lane.b32.xlu2 %v1781_v61, %s1896_s19 }
 0xd25   :  { %v521_v63 = vpop.permute.xlu2 %520 }
 0xd26   :  { %v523_v1 = vmul.f32 %v521_v63, %v504_v56 }
 0xd28   :  { %525 = vrot.lane.b32.xlu0 %v523_v1, %s1897_s22 }
 0xd9a   :  { %v526_v10 = vpop.permute.xlu0 %525 }
 0xd9b   :  { %528 = vst.msk [vmem:[#allocation2 + $0x28] sm:$0xff] %vm133_vm1, %v526_v10  ;;  %1680 = vmatmul.msk.f32.vlgmr.msrb.gmra.mxu1 %vm133_vm1, %v526_v10 }
 0xd9c   :  { %903 = vmatpush.msrb.mxu1 %v2141_v3 }
 0xd9e   :  { %904 = vmatpush.msrb.mxu1 %v2146_v4 }
 0xda0   :  { %905 = vmatpush.msrb.mxu1 %v2153_v7 }
 0xda2   :  { %v670_v12 = vld [vmem:[#allocation2 + $0x28] sm:$0xff]  ;;  %906 = vmatpush.msrb.mxu1 %v2160_v9 }
 0xda3   :  { %1689 = vmatmul.msk.f32.gmra.mxu3 %vm133_vm1, %v670_v12  ;;  %1694 = vmatmul.msk.f32.vlgmr.msra.gmra.mxu1 %vm133_vm1, %v1692_v11 }
 0xda4   :  { %1033 = vmatpush.msra.mxu1 %v2141_v3 }
 0xda6   :  { %1034 = vmatpush.msra.mxu1 %v2146_v4 }
 0xda8   :  { %1035 = vmatpush.msra.mxu1 %v2153_v7 }
 0xdaa   :  { %1036 = vmatpush.msra.mxu1 %v2160_v9 }
 0xe18   :  { %v548_v15 = vpop.f32.mrf.mxu1 }
 0xe19   :  { %v551_v16 = vadd.f32 %v548_v15, %v126_v14  ;;  %v730_v14 = vadd.f32 %v2185_v17, %v729_v13 }
 0xe1b   :  { %1782 = vtanh.f32 %v551_v16  ;;  %v1681_v23 = vmul.f32 -1.442695, %v551_v16 }
 0xe20   :  { %v774_v2 = vpop.f32.mrf.mxu1 }
 0xe21   :  { %v1783_v5 = vpop.eup %1782  ;;  %v777_v19 = vadd.f32 %v774_v2, %v727_v0 }
 0xe22   :  { %574 = vrot.lane.b32.xlu1 %v1783_v5, %s1896_s19 }
 0xe23   :  { %1784 = vtanh.f32 %v777_v19  ;;  %v1695_v6 = vmul.f32 -1.442695, %v777_v19 }
 0xe25   :  { %1786 = vpow2.f32 %v1695_v6 }
 0xe29   :  { %v1785_v20 = vpop.eup %1784 }
 0xe2a   :  { %799 = vrot.lane.b32.xlu1 %v1693_v8, %s1897_s22  ;;  %804 = vrot.lane.b32.xlu2 %v1785_v20, %s1896_s19 }
 0xe2b   :  { %v1787_v21 = vpop.eup %1786 }
 0xe2c   :  { %v781_v22 = vadd.f32 1.0, %v1787_v21 }
 0xe2e   :  { %1788 = vrcp.f32 %v781_v22  ;;  %v793_v32 = vand.u32 2147483648, %v781_v22  ;;  %vm787_vm13 = vweird.f32 %v781_v22  ;;  %v791_v33 = vand.u32 2147483647, %v781_v22 }
 0xe2f   :  { %1790 = vpow2.f32 %v1681_v23 }
 0xe30   :  { %v794_v36 = vor.u32 1.1754944e-38, %v793_v32  ;;  %vm792_vm15 = vcmp.eq.f32.partialorder %v791_v33, 8.507059e+37 }
 0xe34   :  { %v1789_v24 = vpop.eup %1788 }
 0xe35   :  { %v1791_v25 = vpop.eup %1790  ;;  %v783_v26 = vmul.f32 %v1789_v24, %v781_v22  ;;  %vm788_vm12 = vweird.f32 %v1789_v24 }
 0xe36   :  { %v555_v27 = vadd.f32 1.0, %v1791_v25  ;;  %vm789_vm14 = vmor %vm787_vm13, %vm788_vm12 }
 0xe37   :  { %v784_v28 = vsub.f32 1.0, %v783_v26 }
 0xe38   :  { %1792 = vrcp.f32 %v555_v27  ;;  %v567_v43 = vand.u32 2147483648, %v555_v27  ;;  %vm561_vm3 = vweird.f32 %v555_v27  ;;  %v565_v44 = vand.u32 2147483647, %v555_v27 }
 0xe39   :  { %v785_v29 = vmul.f32 %v1789_v24, %v784_v28 }
 0xe3a   :  { %v568_v46 = vor.u32 1.1754944e-38, %v567_v43  ;;  %vm566_vm5 = vcmp.eq.f32.partialorder %v565_v44, 8.507059e+37 }
 0xe3b   :  { %v786_v30 = vadd.f32 %v1789_v24, %v785_v29 }
 0xe3d   :  { %v790_v34 = vsel %vm789_vm14, %v1789_v24, %v786_v30 }
 0xe3e   :  { %v1793_v31 = vpop.eup %1792  ;;  %v795_v38 = vsel %vm792_vm15, %v794_v36, %v790_v34  ;;  %v732_v36 = vpop.f32.mrf.mxu3 }
 0xe3f   :  { %v557_v35 = vmul.f32 %v1793_v31, %v555_v27  ;;  %vm562_vm2 = vweird.f32 %v1793_v31 }
 0xe40   :  { %vm563_vm4 = vmor %vm561_vm3, %vm562_vm2 }
 0xe41   :  { %v558_v40 = vsub.f32 1.0, %v557_v35 }
 0xe43   :  { %v559_v41 = vmul.f32 %v1793_v31, %v558_v40 }
 0xe45   :  { %v560_v42 = vadd.f32 %v1793_v31, %v559_v41 }
 0xe47   :  { %v564_v45 = vsel %vm563_vm4, %v1793_v31, %v560_v42 }
 0xe48   :  { %v569_v48 = vsel %vm566_vm5, %v568_v46, %v564_v45 }
 0xe49   :  { %v572_v55 = vmul.f32 %v569_v48, %v2129_v60  ;;  %v54_v60 = vld [vmem:[%s2623_s0 + $0x38] sm:$0xff] }
 0xe4a   :  { %1667 = vmatmul.msk.f32.gmra.mxu0 %vm65_vm0, %v54_v60 }
 0xe84   :  { %v805_v37 = vpop.permute.xlu2 %804 }
 0xe85   :  { %v807_v39 = vmul.f32 %v805_v37, %v795_v38  ;;  %v733_v37 = vadd.f32 %v2185_v17, %v732_v36 }
 0xe87   :  { %809 = vrot.lane.b32.xlu2 %v807_v39, %s1897_s22 }
 0xe94   :  { %v575_v47 = vpop.permute.xlu1 %574 }
 0xe95   :  { %v577_v49 = vmul.f32 %v575_v47, %v569_v48 }
 0xe97   :  { %579 = vrot.lane.b32.xlu0 %v577_v49, %s1897_s22 }
 0xe9c   :  { %v800_v50 = vpop.permute.xlu1 %799 }
 0xe9d   :  { %v802_v51 = vmul.f32 %v800_v50, %v795_v38 }
 0xee1   :  { %v810_v52 = vpop.permute.xlu2 %809 }
 0xee2   :  { %v2196_v53 = vadd.f32 %v810_v52, %v802_v51 }
 0xee4   :  { %1794 = vtanh.f32 %v2196_v53 }
 0xeea   :  { %v1795_v54 = vpop.eup %1794 }
 0xeeb   :  { %815 = vrot.lane.b32.xlu1 %v1795_v54, %s1896_s19 }
 0xf09   :  { %v580_v56 = vpop.permute.xlu0 %579 }
 0xf0a   :  { %v2201_v57 = vadd.f32 %v580_v56, %v572_v55 }
 0xf0c   :  { %1796 = vtanh.f32 %v2201_v57 }
 0xf12   :  { %v1797_v58 = vpop.eup %1796 }
 0xf13   :  { %585 = vrot.lane.b32.xlu0 %v1797_v58, %s1896_s19 }
 0xf5d   :  { %v816_v59 = vpop.permute.xlu1 %815 }
 0xf5e   :  { %v818_v61 = vmul.f32 %v816_v59, %v795_v38 }
 0xf60   :  { %820 = vrot.lane.b32.xlu0 %v818_v61, %s1897_s22 }
 0xf85   :  { %v586_v62 = vpop.permute.xlu0 %585 }
 0xf86   :  { %v588_v63 = vmul.f32 %v586_v62, %v569_v48 }
 0xf88   :  { %590 = vrot.lane.b32.xlu2 %v588_v63, %s1897_s22 }
 0xfd2   :  { %v821_v1 = vpop.permute.xlu0 %820 }
 0xfd3   :  { %823 = vst.msk [vmem:[#allocation2] sm:$0xff] %vm133_vm1, %v821_v1 }
 0xfe2   :  { %v591_v10 = vpop.permute.xlu2 %590 }
 0xfe3   :  { %593 = vst.msk [vmem:[#allocation2 + $0x30] sm:$0xff] %vm133_vm1, %v591_v10  ;;  %1682 = vmatmul.msk.f32.vlgmr.msrb.gmra.mxu2 %vm133_vm1, %v591_v10 }
 0xfe4   :  { %968 = vmatpush.msrb.mxu2 %v2141_v3 }
 0xfe6   :  { %969 = vmatpush.msrb.mxu2 %v2146_v4 }
 0xfe8   :  { %970 = vmatpush.msrb.mxu2 %v2153_v7 }
 0xfea   :  { %v671_v11 = vld [vmem:[#allocation2 + $0x30] sm:$0xff]  ;;  %971 = vmatpush.msrb.mxu2 %v2160_v9 }
 0xfeb   :  { %1690 = vmatmul.msk.f32.gmra.mxu3 %vm133_vm1, %v671_v11  ;;  %1696 = vmatmul.msk.f32.vlgmr.msra.gmra.mxu2 %vm133_vm1, %v821_v1  ;;  %v735_v1 = vpop.f32.mrf.mxu3 }
 0xfec   :  { %1098 = vmatpush.msra.mxu2 %v2141_v3  ;;  %v736_v10 = vadd.f32 %v2185_v17, %v735_v1 }
 0xfee   :  { %1099 = vmatpush.msra.mxu2 %v2146_v4 }
 0xff0   :  { %1100 = vmatpush.msra.mxu2 %v2153_v7 }
 0xff2   :  { %1101 = vmatpush.msra.mxu2 %v2160_v9 }
0x1066   :  { %v2224_v12 = vpop.f32.mrf.mxu2 }
0x106e   :  { %v843_v15 = vpop.f32.mrf.mxu2 }
0x106f   :  { %v846_v16 = vadd.f32 %v843_v15, %v730_v14 }
0x1071   :  { %1798 = vtanh.f32 %v846_v16  ;;  %v1697_v0 = vmul.f32 -1.442695, %v846_v16 }
0x1073   :  { %1800 = vpow2.f32 %v1697_v0 }
0x1077   :  { %v1799_v18 = vpop.eup %1798 }
0x1078   :  { %869 = vrot.lane.b32.xlu1 %v1799_v18, %s1896_s19 }
0x1079   :  { %v1801_v2 = vpop.eup %1800 }
0x107a   :  { %v850_v5 = vadd.f32 1.0, %v1801_v2 }
0x107c   :  { %1802 = vrcp.f32 %v850_v5  ;;  %v862_v22 = vand.u32 2147483648, %v850_v5  ;;  %vm856_vm6 = vweird.f32 %v850_v5  ;;  %v860_v23 = vand.u32 2147483647, %v850_v5 }
0x107e   :  { %v863_v25 = vor.u32 1.1754944e-38, %v862_v22  ;;  %vm861_vm8 = vcmp.eq.f32.partialorder %v860_v23, 8.507059e+37 }
0x1082   :  { %v1803_v19 = vpop.eup %1802 }
0x1083   :  { %v852_v8 = vmul.f32 %v1803_v19, %v850_v5  ;;  %vm857_vm0 = vweird.f32 %v1803_v19 }
0x1084   :  { %vm858_vm7 = vmor %vm856_vm6, %vm857_vm0 }
0x1085   :  { %v853_v20 = vsub.f32 1.0, %v852_v8 }
0x1087   :  { %v854_v6 = vmul.f32 %v1803_v19, %v853_v20 }
0x1089   :  { %v855_v21 = vadd.f32 %v1803_v19, %v854_v6 }
0x108b   :  { %v859_v24 = vsel %vm858_vm7, %v1803_v19, %v855_v21 }
0x108c   :  { %v864_v27 = vsel %vm861_vm8, %v863_v25, %v859_v24 }
0x108d   :  { %v867_v29 = vmul.f32 %v864_v27, %v2196_v53 }
0x10ea   :  { %v870_v26 = vpop.permute.xlu1 %869 }
0x10eb   :  { %v872_v28 = vmul.f32 %v870_v26, %v864_v27 }
0x10ed   :  { %874 = vrot.lane.b32.xlu2 %v872_v28, %s1897_s22 }
0x1147   :  { %v875_v30 = vpop.permute.xlu2 %874 }
0x1148   :  { %v877_v31 = vadd.f32 %v875_v30, %v867_v29  ;;  %v738_v29 = vpop.f32.mrf.mxu3 }
0x1149   :  { %v739_v30 = vadd.f32 %v2185_v17, %v738_v29 }
0x114a   :  { %1804 = vtanh.f32 %v877_v31 }
0x1150   :  { %v1805_v32 = vpop.eup %1804 }
0x1151   :  { %880 = vrot.lane.b32.xlu0 %v1805_v32, %s1896_s19 }
0x11c3   :  { %v881_v33 = vpop.permute.xlu0 %880 }
0x11c4   :  { %v883_v34 = vmul.f32 %v881_v33, %v864_v27 }
0x11c6   :  { %885 = vrot.lane.b32.xlu1 %v883_v34, %s1897_s22 }
0x1238   :  { %v886_v35 = vpop.permute.xlu1 %885 }
0x1239   :  { %888 = vst.msk [vmem:[#allocation2 + $0x8] sm:$0xff] %vm133_vm1, %v886_v35  ;;  %1698 = vmatmul.msk.f32.vlgmr.msrb.gmra.mxu1 %vm133_vm1, %v886_v35 }
0x123a   :  { %1163 = vmatpush.msrb.mxu1 %v2141_v3 }
0x123c   :  { %1164 = vmatpush.msrb.mxu1 %v2146_v4 }
0x123e   :  { %1165 = vmatpush.msrb.mxu1 %v2153_v7 }
0x1240   :  { %1166 = vmatpush.msrb.mxu1 %v2160_v9 }
0x12b6   :  { %v908_v38 = vpop.f32.mrf.mxu1 }
0x12b7   :  { %v911_v39 = vadd.f32 %v908_v38, %v733_v37 }
0x12b9   :  { %1806 = vtanh.f32 %v911_v39  ;;  %v1699_v41 = vmul.f32 -1.442695, %v911_v39 }
0x12bb   :  { %1808 = vpow2.f32 %v1699_v41 }
0x12bf   :  { %v1807_v40 = vpop.eup %1806 }
0x12c0   :  { %934 = vrot.lane.b32.xlu2 %v1807_v40, %s1896_s19 }
0x12c1   :  { %v1809_v42 = vpop.eup %1808 }
0x12c2   :  { %v915_v43 = vadd.f32 1.0, %v1809_v42 }
0x12c4   :  { %1810 = vrcp.f32 %v915_v43  ;;  %v927_v49 = vand.u32 2147483648, %v915_v43  ;;  %vm921_vm10 = vweird.f32 %v915_v43  ;;  %v925_v50 = vand.u32 2147483647, %v915_v43 }
0x12c6   :  { %v928_v52 = vor.u32 1.1754944e-38, %v927_v49  ;;  %vm926_vm12 = vcmp.eq.f32.partialorder %v925_v50, 8.507059e+37 }
0x12ca   :  { %v1811_v44 = vpop.eup %1810 }
0x12cb   :  { %v917_v45 = vmul.f32 %v1811_v44, %v915_v43  ;;  %vm922_vm9 = vweird.f32 %v1811_v44 }
0x12cc   :  { %vm923_vm11 = vmor %vm921_vm10, %vm922_vm9 }
0x12cd   :  { %v918_v46 = vsub.f32 1.0, %v917_v45 }
0x12cf   :  { %v919_v47 = vmul.f32 %v1811_v44, %v918_v46 }
0x12d1   :  { %v920_v48 = vadd.f32 %v1811_v44, %v919_v47 }
0x12d3   :  { %v924_v51 = vsel %vm923_vm11, %v1811_v44, %v920_v48 }
0x12d4   :  { %v929_v54 = vsel %vm926_vm12, %v928_v52, %v924_v51 }
0x12d5   :  { %v932_v56 = vmul.f32 %v929_v54, %v877_v31 }
0x131a   :  { %v935_v53 = vpop.permute.xlu2 %934 }
0x131b   :  { %v937_v55 = vmul.f32 %v935_v53, %v929_v54 }
0x131d   :  { %939 = vrot.lane.b32.xlu0 %v937_v55, %s1897_s22 }
0x138f   :  { %v940_v58 = vpop.permute.xlu0 %939 }
0x1390   :  { %v942_v59 = vadd.f32 %v940_v58, %v932_v56  ;;  %v741_v56 = vpop.f32.mrf.mxu3 }
0x1391   :  { %v742_v58 = vadd.f32 %v2185_v17, %v741_v56  ;;  %v1422_v56 = vld [vmem:[%s2631_s11 + $0x38] sm:$0xff] }
0x1392   :  { %1812 = vtanh.f32 %v942_v59 }
0x1398   :  { %v1813_v61 = vpop.eup %1812 }
0x1399   :  { %945 = vrot.lane.b32.xlu1 %v1813_v61, %s1896_s19 }
0x140b   :  { %v946_v62 = vpop.permute.xlu1 %945 }
0x140c   :  { %v948_v63 = vmul.f32 %v946_v62, %v929_v54 }
0x140e   :  { %950 = vrot.lane.b32.xlu2 %v948_v63, %s1897_s22 }
0x1468   :  { %v951_v60 = vpop.permute.xlu2 %950 }
0x1469   :  { %953 = vst.msk [vmem:[#allocation2 + $0x10] sm:$0xff] %vm133_vm1, %v951_v60  ;;  %1700 = vmatmul.msk.f32.vlgmr.msrb.gmra.mxu2 %vm133_vm1, %v951_v60 }
0x146a   :  { %1228 = vmatpush.msrb.mxu2 %v2141_v3 }
0x146c   :  { %1229 = vmatpush.msrb.mxu2 %v2146_v4 }
0x146e   :  { %1230 = vmatpush.msrb.mxu2 %v2153_v7 }
0x1470   :  { %1231 = vmatpush.msrb.mxu2 %v2160_v9 }
0x14ec   :  { %v973_v11 = vpop.f32.mrf.mxu2 }
0x14ed   :  { %v976_v13 = vadd.f32 %v973_v11, %v736_v10 }
0x14ef   :  { %1814 = vtanh.f32 %v976_v13  ;;  %v1701_v15 = vmul.f32 -1.442695, %v976_v13 }
0x14f1   :  { %1816 = vpow2.f32 %v1701_v15  ;;  %v128_v15 = vpop.f32.mrf.mxu0 }
0x14f5   :  { %v1815_v14 = vpop.eup %1814 }
0x14f6   :  { %999 = vrot.lane.b32.xlu0 %v1815_v14, %s1896_s19 }
0x14f7   :  { %v1817_v16 = vpop.eup %1816 }
0x14f8   :  { %v980_v18 = vadd.f32 1.0, %v1817_v16 }
0x14fa   :  { %1818 = vrcp.f32 %v980_v18  ;;  %v992_v9 = vand.u32 2147483648, %v980_v18  ;;  %vm986_vm14 = vweird.f32 %v980_v18  ;;  %v990_v5 = vand.u32 2147483647, %v980_v18 }
0x14fc   :  { %v993_v8 = vor.u32 1.1754944e-38, %v992_v9  ;;  %vm991_vm2 = vcmp.eq.f32.partialorder %v990_v5, 8.507059e+37 }
0x1500   :  { %v1819_v3 = vpop.eup %1818 }
0x1501   :  { %v982_v4 = vmul.f32 %v1819_v3, %v980_v18  ;;  %vm987_vm13 = vweird.f32 %v1819_v3 }
0x1502   :  { %vm988_vm15 = vmor %vm986_vm14, %vm987_vm13 }
0x1503   :  { %v983_v0 = vsub.f32 1.0, %v982_v4  ;;  %v1894_v4 = vld [vmem:[%s2625_s5] ss:$0 sm:$0xff] }
0x1505   :  { %v984_v7 = vmul.f32 %v1819_v3, %v983_v0  ;;  %v129_v0 = vadd.f32 %v1894_v4, %v128_v15 }
0x1507   :  { %v985_v2 = vadd.f32 %v1819_v3, %v984_v7  ;;  %v616_v9 = vadd.f32 %v2224_v12, %v129_v0 }
0x1509   :  { %v989_v19 = vsel %vm988_vm15, %v1819_v3, %v985_v2 }
0x150a   :  { %v994_v6 = vsel %vm991_vm2, %v993_v8, %v989_v19 }
0x150b   :  { %v997_v22 = vmul.f32 %v994_v6, %v942_v59 }
0x1568   :  { %v1000_v20 = vpop.permute.xlu0 %999 }
0x1569   :  { %v1002_v21 = vmul.f32 %v1000_v20, %v994_v6 }
0x156b   :  { %1004 = vrot.lane.b32.xlu1 %v1002_v21, %s1897_s22 }
0x15dd   :  { %v1005_v23 = vpop.permute.xlu1 %1004 }
0x15de   :  { %v1007_v24 = vadd.f32 %v1005_v23, %v997_v22 }
0x15e0   :  { %1820 = vtanh.f32 %v1007_v24 }
0x15e6   :  { %v1821_v25 = vpop.eup %1820 }
0x15e7   :  { %1010 = vrot.lane.b32.xlu2 %v1821_v25, %s1896_s19 }
0x1641   :  { %v1011_v26 = vpop.permute.xlu2 %1010 }
0x1642   :  { %v1013_v27 = vmul.f32 %v1011_v26, %v994_v6 }
0x1644   :  { %1015 = vrot.lane.b32.xlu0 %v1013_v27, %s1897_s22 }
0x16b6   :  { %v1016_v28 = vpop.permute.xlu0 %1015 }
0x16b7   :  { %1018 = vst.msk [vmem:[#allocation2 + $0x18] sm:$0xff] %vm133_vm1, %v1016_v28  ;;  %1702 = vmatmul.msk.f32.vlgmr.msra.gmra.mxu1 %vm133_vm1, %v1016_v28 }
0x1734   :  { %v1038_v31 = vpop.f32.mrf.mxu1 }
0x1735   :  { %v1041_v32 = vadd.f32 %v1038_v31, %v739_v30 }
0x1737   :  { %1822 = vtanh.f32 %v1041_v32  ;;  %v1703_v34 = vmul.f32 -1.442695, %v1041_v32 }
0x1739   :  { %1824 = vpow2.f32 %v1703_v34 }
0x173d   :  { %v1823_v33 = vpop.eup %1822 }
0x173e   :  { %1064 = vrot.lane.b32.xlu1 %v1823_v33, %s1896_s19 }
0x173f   :  { %v1825_v35 = vpop.eup %1824 }
0x1740   :  { %v1045_v36 = vadd.f32 1.0, %v1825_v35 }
0x1742   :  { %1826 = vrcp.f32 %v1045_v36  ;;  %v1057_v42 = vand.u32 2147483648, %v1045_v36  ;;  %vm1051_vm4 = vweird.f32 %v1045_v36  ;;  %v1055_v43 = vand.u32 2147483647, %v1045_v36 }
0x1744   :  { %v1058_v45 = vor.u32 1.1754944e-38, %v1057_v42  ;;  %vm1056_vm0 = vcmp.eq.f32.partialorder %v1055_v43, 8.507059e+37  ;;  %v1297_v42 = vld [vmem:[%s2630_s9 + $0x10] sm:$0xff]  ;;  %v1295_v43 = vld [vmem:[%s2630_s9] sm:$0xff] }
0x1748   :  { %v1827_v37 = vpop.eup %1826 }
0x1749   :  { %v1047_v38 = vmul.f32 %v1827_v37, %v1045_v36  ;;  %vm1052_vm3 = vweird.f32 %v1827_v37 }
0x174a   :  { %vm1053_vm5 = vmor %vm1051_vm4, %vm1052_vm3 }
0x174b   :  { %v1048_v39 = vsub.f32 1.0, %v1047_v38 }
0x174d   :  { %v1049_v40 = vmul.f32 %v1827_v37, %v1048_v39 }
0x174f   :  { %v1050_v41 = vadd.f32 %v1827_v37, %v1049_v40  ;;  %v1301_v40 = vld [vmem:[%s2630_s9 + $0x30] sm:$0xff] }
0x1750   :  { %1345 = vmatpush.msra.mxu1 %v1301_v40 }
0x1751   :  { %v1054_v44 = vsel %vm1053_vm5, %v1827_v37, %v1050_v41  ;;  %v1299_v41 = vld [vmem:[%s2630_s9 + $0x20] sm:$0xff] }
0x1752   :  { %v1059_v47 = vsel %vm1056_vm0, %v1058_v45, %v1054_v44  ;;  %1346 = vmatpush.msra.mxu1 %v1299_v41  ;;  %v2294_v45 = vld [vmem:[#allocation2] sm:$0xff] }
0x1753   :  { %v1062_v49 = vmul.f32 %v1059_v47, %v1007_v24  ;;  %v1683_v24 = vmul.f32 -1.442695, %v616_v9 }
0x1754   :  { %1347 = vmatpush.msra.mxu1 %v1297_v42 }
0x1756   :  { %1348 = vmatpush.msra.mxu1 %v1295_v43 }
0x17b0   :  { %v1065_v46 = vpop.permute.xlu1 %1064 }
0x17b1   :  { %v1067_v48 = vmul.f32 %v1065_v46, %v1059_v47  ;;  %v2298_v46 = vld [vmem:[#allocation2 + $0x8] sm:$0xff] }
0x17b3   :  { %1069 = vrot.lane.b32.xlu2 %v1067_v48, %s1897_s22  ;;  %v1429_v48 = vld [vmem:[%s2631_s11 + $0x70] sm:$0xff] }
0x180d   :  { %v1070_v50 = vpop.permute.xlu2 %1069 }
0x180e   :  { %v1072_v51 = vadd.f32 %v1070_v50, %v1062_v49  ;;  %v1428_v49 = vld [vmem:[%s2631_s11 + $0x68] sm:$0xff]  ;;  %v1427_v50 = vld [vmem:[%s2631_s11 + $0x60] sm:$0xff] }
0x1810   :  { %1828 = vtanh.f32 %v1072_v51 }
0x1816   :  { %v1829_v52 = vpop.eup %1828 }
0x1817   :  { %1075 = vrot.lane.b32.xlu0 %v1829_v52, %s1896_s19  ;;  %v2317_v52 = vld [vmem:[#allocation2 + $0x10] sm:$0xff] }
0x1889   :  { %v1076_v53 = vpop.permute.xlu0 %1075 }
0x188a   :  { %v1078_v54 = vmul.f32 %v1076_v53, %v1059_v47  ;;  %v1430_v47 = vld [vmem:[%s2631_s11 + $0x78] sm:$0xff]  ;;  %v1425_v53 = vld [vmem:[%s2631_s11 + $0x50] sm:$0xff] }
0x188b   :  { %1451 = vmatpush.msrb.mxu0 %v1430_v47 }
0x188c   :  { %1080 = vrot.lane.b32.xlu1 %v1078_v54, %s1897_s22  ;;  %v1424_v54 = vld [vmem:[%s2631_s11 + $0x48] sm:$0xff] }
0x188d   :  { %1452 = vmatpush.msrb.mxu0 %v1429_v48 }
0x188f   :  { %1453 = vmatpush.msrb.mxu0 %v1428_v49 }
0x1891   :  { %1454 = vmatpush.msrb.mxu0 %v1427_v50 }
0x18fe   :  { %v1081_v55 = vpop.permute.xlu1 %1080 }
0x18ff   :  { %1083 = vst.msk [vmem:[#allocation2 + $0x20] sm:$0xff] %vm133_vm1, %v1081_v55  ;;  %1704 = vmatmul.msk.f32.vlgmr.msra.gmra.mxu2 %vm133_vm1, %v1081_v55  ;;  %v1423_v55 = vld [vmem:[%s2631_s11 + $0x40] sm:$0xff] }
0x1982   :  { %v1103_v59 = vpop.f32.mrf.mxu2 }
0x1983   :  { %v1106_v61 = vadd.f32 %v1103_v59, %v742_v58  ;;  %v2333_v58 = vld [vmem:[#allocation2 + $0x18] sm:$0xff]  ;;  %v1421_v59 = vld [vmem:[%s2631_s11 + $0x30] sm:$0xff] }
0x1985   :  { %1830 = vtanh.f32 %v1106_v61  ;;  %v1705_v63 = vmul.f32 -1.442695, %v1106_v61  ;;  %v2340_v61 = vld [vmem:[#allocation2 + $0x20] sm:$0xff] }
0x1987   :  { %1832 = vpow2.f32 %v1705_v63  ;;  %v1420_v63 = vld [vmem:[%s2631_s11 + $0x28] sm:$0xff] }
0x198b   :  { %v1831_v62 = vpop.eup %1830 }
0x198c   :  { %1129 = vrot.lane.b32.xlu2 %v1831_v62, %s1896_s19 }
0x198d   :  { %v1833_v60 = vpop.eup %1832 }
0x198e   :  { %v1110_v1 = vadd.f32 1.0, %v1833_v60  ;;  %v1419_v60 = vld [vmem:[%s2631_s11 + $0x20] sm:$0xff] }
0x1990   :  { %1834 = vrcp.f32 %v1110_v1  ;;  %v1122_v18 = vand.u32 2147483648, %v1110_v1  ;;  %vm1116_vm7 = vweird.f32 %v1110_v1  ;;  %v1120_v3 = vand.u32 2147483647, %v1110_v1 }
0x1991   :  { %1836 = vtanh.f32 %v616_v9 }
0x1992   :  { %v1123_v2 = vor.u32 1.1754944e-38, %v1122_v18  ;;  %vm1121_vm9 = vcmp.eq.f32.partialorder %v1120_v3, 8.507059e+37  ;;  %v2370_v3 = vld [vmem:[%s2632_s10] sm:$0x3] }
0x1996   :  { %v1835_v10 = vpop.eup %1834 }
0x1997   :  { %v1112_v11 = vmul.f32 %v1835_v10, %v1110_v1  ;;  %vm1117_vm6 = vweird.f32 %v1835_v10  ;;  %v1837_v20 = vpop.eup %1836  ;;  %v1418_v1 = vld [vmem:[%s2631_s11 + $0x18] sm:$0xff] }
0x1998   :  { %vm1118_vm8 = vmor %vm1116_vm7, %vm1117_vm6 }
0x1999   :  { %v1113_v13 = vsub.f32 1.0, %v1112_v11  ;;  %v1416_v11 = vld [vmem:[%s2631_s11 + $0x8] sm:$0xff] }
0x199b   :  { %v1114_v14 = vmul.f32 %v1835_v10, %v1113_v13  ;;  %v1415_v13 = vld [vmem:[%s2631_s11] sm:$0xff] }
0x199d   :  { %v1115_v16 = vadd.f32 %v1835_v10, %v1114_v14  ;;  %v744_v14 = vpop.f32.mrf.mxu3 }
0x199e   :  { %v745_v15 = vadd.f32 %v2185_v17, %v744_v14  ;;  %v1439_v14 = vld [vmem:[%s2631_s11 + $0xc0] sm:$0xff] }
0x199f   :  { %v1119_v7 = vsel %vm1118_vm8, %v1835_v10, %v1115_v16  ;;  %v1417_v10 = vld [vmem:[%s2631_s11 + $0x10] sm:$0xff] }
0x19a0   :  { %v1124_v19 = vsel %vm1121_vm9, %v1123_v2, %v1119_v7  ;;  %v2375_v7 = vperm.slane %v2370_v3, 0 }
0x19a1   :  { %v1127_v6 = vmul.f32 %v1124_v19, %v1072_v51  ;;  %v1426_v51 = vld [vmem:[%s2631_s11 + $0x58] sm:$0xff] }
0x19a2   :  { %1455 = vmatpush.msrb.mxu0 %v1426_v51 }
0x19a4   :  { %1456 = vmatpush.msrb.mxu0 %v1425_v53 }
0x19a6   :  { %1457 = vmatpush.msrb.mxu0 %v1424_v54  ;;  %v1302_v54 = vld [vmem:[%s2630_s9 + $0x38] sm:$0xff] }
0x19a7   :  { %1386 = vmatpush.msra.mxu2 %v1302_v54  ;;  %v1541_v54 = vlaneseq }
0x19a8   :  { %1458 = vmatpush.msrb.mxu0 %v1423_v55  ;;  %v1300_v55 = vld [vmem:[%s2630_s9 + $0x28] sm:$0xff] }
0x19a9   :  { %1387 = vmatpush.msra.mxu2 %v1300_v55  ;;  %v2498_v55 = vld [vmem:[%s2633_s12] ss:$0 sm:$0xff] }
0x19aa   :  { %1459 = vmatpush.msrb.mxu0 %v1422_v56  ;;  %v1298_v56 = vld [vmem:[%s2630_s9 + $0x18] sm:$0xff] }
0x19ab   :  { %1388 = vmatpush.msra.mxu2 %v1298_v56 }
0x19ac   :  { %1460 = vmatpush.msrb.mxu0 %v1421_v59  ;;  %v1296_v59 = vld [vmem:[%s2630_s9 + $0x8] sm:$0xff] }
0x19ad   :  { %1389 = vmatpush.msra.mxu2 %v1296_v59  ;;  %v2500_v59 = vand.u32 127, %v1541_v54 }
0x19ae   :  { %1461 = vmatpush.msrb.mxu0 %v1420_v63 }
0x19af   :  { %vm1543_vm7 = vcmp.lt.s32.totalorder %v2500_v59, 64 }
0x19b0   :  { %1462 = vmatpush.msrb.mxu0 %v1419_v60 }
0x19b2   :  { %1463 = vmatpush.msrb.mxu0 %v1418_v1  ;;  %v1446_v1 = vld [vmem:[%s2631_s11 + $0xf8] sm:$0xff] }
0x19b3   :  { %1492 = vmatpush.msrb.mxu3 %v1446_v1 }
0x19b4   :  { %1464 = vmatpush.msrb.mxu0 %v1417_v10  ;;  %v1445_v10 = vld [vmem:[%s2631_s11 + $0xf0] sm:$0xff] }
0x19b5   :  { %1493 = vmatpush.msrb.mxu3 %v1445_v10 }
0x19b6   :  { %1465 = vmatpush.msrb.mxu0 %v1416_v11  ;;  %v1444_v11 = vld [vmem:[%s2631_s11 + $0xe8] sm:$0xff] }
0x19b7   :  { %1494 = vmatpush.msrb.mxu3 %v1444_v11 }
0x19b8   :  { %1466 = vmatpush.msrb.mxu0 %v1415_v13  ;;  %v1440_v13 = vld [vmem:[%s2631_s11 + $0xc8] sm:$0xff] }
0x19e6   :  { %v1130_v5 = vpop.permute.xlu2 %1129 }
0x19e7   :  { %v1132_v8 = vmul.f32 %v1130_v5, %v1124_v19 }
0x19e9   :  { %1134 = vrot.lane.b32.xlu0 %v1132_v8, %s1897_s22 }
0x19f1   :  { %639 = vrot.lane.b32.xlu0 %v1837_v20, %s1896_s19 }
0x1a5b   :  { %v1135_v21 = vpop.permute.xlu0 %1134 }
0x1a5c   :  { %v2271_v22 = vadd.f32 %v1135_v21, %v1127_v6 }
0x1a5e   :  { %1838 = vtanh.f32 %v2271_v22 }
0x1a5f   :  { %1840 = vpow2.f32 %v1683_v24 }
0x1a63   :  { %v640_v37 = vpop.permute.xlu0 %639 }
0x1a64   :  { %v1839_v23 = vpop.eup %1838 }
0x1a65   :  { %1140 = vrot.lane.b32.xlu1 %v1839_v23, %s1896_s19  ;;  %v1841_v12 = vpop.eup %1840 }
0x1a66   :  { %v620_v25 = vadd.f32 1.0, %v1841_v12 }
0x1a68   :  { %1842 = vrcp.f32 %v620_v25  ;;  %v632_v33 = vand.u32 2147483648, %v620_v25  ;;  %vm626_vm11 = vweird.f32 %v620_v25  ;;  %v630_v34 = vand.u32 2147483647, %v620_v25 }
0x1a6a   :  { %v633_v36 = vor.u32 1.1754944e-38, %v632_v33  ;;  %vm631_vm13 = vcmp.eq.f32.partialorder %v630_v34, 8.507059e+37 }
0x1a6e   :  { %v1843_v26 = vpop.eup %1842 }
0x1a6f   :  { %v622_v27 = vmul.f32 %v1843_v26, %v620_v25  ;;  %vm627_vm10 = vweird.f32 %v1843_v26 }
0x1a70   :  { %vm628_vm12 = vmor %vm626_vm11, %vm627_vm10 }
0x1a71   :  { %v623_v28 = vsub.f32 1.0, %v622_v27 }
0x1a73   :  { %v624_v29 = vmul.f32 %v1843_v26, %v623_v28 }
0x1a75   :  { %v625_v31 = vadd.f32 %v1843_v26, %v624_v29 }
0x1a77   :  { %v629_v35 = vsel %vm628_vm12, %v1843_v26, %v625_v31 }
0x1a78   :  { %v2276_v38 = vsel %vm631_vm13, %v633_v36, %v629_v35 }
0x1a79   :  { %v642_v39 = vmul.f32 %v640_v37, %v2276_v38  ;;  %v637_v0 = vmul.f32 %v2276_v38, %v2201_v57 }
0x1ad7   :  { %v1141_v30 = vpop.permute.xlu1 %1140 }
0x1ad8   :  { %v1143_v32 = vmul.f32 %v1141_v30, %v1124_v19 }
0x1ada   :  { %1145 = vrot.lane.b32.xlu2 %v1143_v32, %s1897_s22 }
0x1ae2   :  { %644 = vrot.lane.b32.xlu2 %v642_v39, %s1897_s22 }
0x1b34   :  { %v1146_v44 = vpop.permute.xlu2 %1145 }
0x1b35   :  { %1148 = vst.msk [vmem:[#allocation2 + $0x28] sm:$0xff] %vm133_vm1, %v1146_v44  ;;  %1706 = vmatmul.msk.f32.vlgmr.msrb.gmra.mxu1 %vm133_vm1, %v1146_v44 }
0x1b3c   :  { %v2344_v62 = vld [vmem:[#allocation2 + $0x28] sm:$0xff]  ;;  %v645_v4 = vpop.permute.xlu2 %644 }
0x1b3d   :  { %1712 = vmatmul.msk.f32.vlgmr.msra.gmra.mxu1 %vm133_vm1, %v2294_v45  ;;  %v2377_v2 = vadd.f32 %v645_v4, %v637_v0  ;;  %v1432_v4 = vld [vmem:[%s2631_s11 + $0x88] sm:$0xff]  ;;  %v1431_v0 = vld [vmem:[%s2631_s11 + $0x80] sm:$0xff] }
0x1b45   :  { %1713 = vmatmul.msk.f32.gmra.mxu1 %vm133_vm1, %v2298_v46 }
0x1b4d   :  { %1714 = vmatmul.msk.f32.gmra.mxu1 %vm133_vm1, %v2317_v52 }
0x1b55   :  { %1715 = vmatmul.msk.f32.gmra.mxu1 %vm133_vm1, %v2333_v58 }
0x1b5d   :  { %1716 = vmatmul.msk.f32.gmra.mxu1 %vm133_vm1, %v2340_v61 }
0x1b65   :  { %1717 = vmatmul.msk.f32.gmra.mxu1 %vm133_vm1, %v2344_v62 }
0x1bb2   :  { %v1168_v16 = vpop.f32.mrf.mxu1 }
0x1bb3   :  { %v1171_v18 = vadd.f32 %v1168_v16, %v745_v15  ;;  %v1438_v15 = vld [vmem:[%s2631_s11 + $0xb8] sm:$0xff]  ;;  %v1436_v16 = vld [vmem:[%s2631_s11 + $0xa8] sm:$0xff] }
0x1bb5   :  { %1844 = vtanh.f32 %v1171_v18  ;;  %v1707_v27 = vmul.f32 -1.442695, %v1171_v18  ;;  %v1434_v18 = vld [vmem:[%s2631_s11 + $0x98] sm:$0xff] }
0x1bb6   :  { %1846 = vtanh.f32 %v2377_v2 }
0x1bb7   :  { %1848 = vpow2.f32 %v1707_v27 }
0x1bba   :  { %v1350_v9 = vpop.f32.mrf.mxu1 }
0x1bbb   :  { %v1845_v5 = vpop.eup %1844  ;;  %v1351_v17 = vadd.f32 %v1350_v9, %v2375_v7 }
0x1bbc   :  { %1194 = vrot.lane.b32.xlu1 %v1845_v5, %s1896_s19  ;;  %v1847_v8 = vpop.eup %1846  ;;  %v1895_v5 = vld [vmem:[%s2628_s8] ss:$0 sm:$0xff] }
0x1bbd   :  { %1467 = vmatmul.f32.vlgmr.msrb.gmra.mxu0 %v1351_v17  ;;  %v1849_v28 = vpop.eup %1848 }
0x1bbe   :  { %v1175_v29 = vadd.f32 1.0, %v1849_v28 }
0x1bc0   :  { %1850 = vrcp.f32 %v1175_v29  ;;  %v1187_v35 = vand.u32 2147483648, %v1175_v29  ;;  %vm1181_vm15 = vweird.f32 %v1175_v29  ;;  %v1185_v36 = vand.u32 2147483647, %v1175_v29 }
0x1bc2   :  { %v1353_v19 = vpop.f32.mrf.mxu1  ;;  %v1188_v39 = vor.u32 1.1754944e-38, %v1187_v35  ;;  %vm1186_vm3 = vcmp.eq.f32.partialorder %v1185_v36, 8.507059e+37 }
0x1bc3   :  { %v1354_v20 = vadd.f32 %v1353_v19, %v2375_v7 }
0x1bc4   :  { %650 = vrot.lane.b32.xlu1 %v1847_v8, %s1896_s19 }
0x1bc5   :  { %1470 = vmatmul.f32.gmra.mxu0 %v1354_v20 }
0x1bc6   :  { %v1851_v30 = vpop.eup %1850 }
0x1bc7   :  { %v1177_v31 = vmul.f32 %v1851_v30, %v1175_v29  ;;  %vm1182_vm14 = vweird.f32 %v1851_v30 }
0x1bc8   :  { %vm1183_vm2 = vmor %vm1181_vm15, %vm1182_vm14 }
0x1bc9   :  { %v1178_v32 = vsub.f32 1.0, %v1177_v31 }
0x1bca   :  { %v1356_v57 = vpop.f32.mrf.mxu1 }
0x1bcb   :  { %v1357_v6 = vadd.f32 %v1356_v57, %v2375_v7  ;;  %v1179_v33 = vmul.f32 %v1851_v30, %v1178_v32 }
0x1bcd   :  { %1473 = vmatmul.f32.gmra.mxu0 %v1357_v6  ;;  %v1180_v34 = vadd.f32 %v1851_v30, %v1179_v33  ;;  %v2484_v6 = vperm.slane %v2370_v3, 1 }
0x1bcf   :  { %v1184_v37 = vsel %vm1183_vm2, %v1851_v30, %v1180_v34 }
0x1bd0   :  { %v1189_v41 = vsel %vm1186_vm3, %v1188_v39, %v1184_v37 }
0x1bd1   :  { %v1192_v47 = vmul.f32 %v1189_v41, %v2271_v22 }
0x1bd2   :  { %v1359_v21 = vpop.f32.mrf.mxu1 }
0x1bd3   :  { %v1360_v23 = vadd.f32 %v1359_v21, %v2375_v7 }
0x1bd5   :  { %1476 = vmatmul.f32.gmra.mxu0 %v1360_v23 }
0x1bda   :  { %v1362_v24 = vpop.f32.mrf.mxu1 }
0x1bdb   :  { %v1363_v12 = vadd.f32 %v1362_v24, %v2375_v7 }
0x1bdd   :  { %1479 = vmatmul.f32.gmra.mxu0 %v1363_v12 }
0x1be2   :  { %v1365_v25 = vpop.f32.mrf.mxu1 }
0x1be3   :  { %v1366_v26 = vadd.f32 %v1365_v25, %v2375_v7 }
0x1be5   :  { %1482 = vmatmul.f32.gmra.mxu0 %v1366_v26 }
0x1c2e   :  { %v1195_v40 = vpop.permute.xlu1 %1194 }
0x1c2f   :  { %v1197_v42 = vmul.f32 %v1195_v40, %v1189_v41 }
0x1c31   :  { %1199 = vrot.lane.b32.xlu0 %v1197_v42, %s1897_s22 }
0x1c36   :  { %v651_v43 = vpop.permute.xlu1 %650 }
0x1c37   :  { %v653_v44 = vmul.f32 %v651_v43, %v2276_v38 }
0x1c39   :  { %655 = vrot.lane.b32.xlu0 %v653_v44, %s1897_s22 }
0x1ca3   :  { %v1200_v48 = vpop.permute.xlu0 %1199 }
0x1ca4   :  { %v2392_v49 = vadd.f32 %v1200_v48, %v1192_v47 }
0x1ca6   :  { %1852 = vtanh.f32 %v2392_v49 }
0x1cab   :  { %v656_v50 = vpop.permute.xlu0 %655 }
0x1cac   :  { %v1853_v51 = vpop.eup %1852  ;;  %658 = vst.msk [vmem:[#allocation2 + $0x38] sm:$0xff] %vm133_vm1, %v656_v50 }
0x1cad   :  { %659 = vst.msk [vmem:[%s2634_s14] sm:$0xff] %vm133_vm1, %v656_v50  ;;  %1205 = vrot.lane.b32.xlu2 %v1853_v51, %s1896_s19 }
0x1cb3   :  { %v672_v38 = vld [vmem:[#allocation2 + $0x38] sm:$0xff] }
0x1cb4   :  { %1691 = vmatmul.msk.f32.gmra.mxu3 %vm133_vm1, %v672_v38 }
0x1d07   :  { %v1206_v22 = vpop.permute.xlu2 %1205 }
0x1d08   :  { %v1208_v53 = vmul.f32 %v1206_v22, %v1189_v41 }
0x1d0a   :  { %1210 = vrot.lane.b32.xlu1 %v1208_v53, %s1897_s22  ;;  %v1468_v53 = vpop.f32.mrf.mxu0 }
0x1d12   :  { %v1471_v56 = vpop.f32.mrf.mxu0 }
0x1d37   :  { %v747_v9 = vpop.f32.mrf.mxu3 }
0x1d38   :  { %v748_v17 = vadd.f32 %v1895_v5, %v747_v9 }
0x1d7c   :  { %v1211_v63 = vpop.permute.xlu1 %1210 }
0x1d7d   :  { %1213 = vst.msk [vmem:[#allocation2 + $0x30] sm:$0xff] %vm133_vm1, %v1211_v63  ;;  %1708 = vmatmul.msk.f32.vlgmr.msrb.gmra.mxu2 %vm133_vm1, %v1211_v63  ;;  %v1469_v63 = vadd.f32 %v2498_v55, %v1468_v53 }
0x1d84   :  { %v1293_v60 = vld [vmem:[#allocation2 + $0x30] sm:$0xff] }
0x1d85   :  { %1718 = vmatmul.msk.f32.gmra.mxu1 %vm133_vm1, %v1293_v60  ;;  %1720 = vmatmul.msk.f32.vlgmr.msra.gmra.mxu2 %vm133_vm1, %v2294_v45  ;;  %v1443_v45 = vld [vmem:[%s2631_s11 + $0xe0] sm:$0xff] }
0x1d86   :  { %1495 = vmatpush.msrb.mxu3 %v1443_v45  ;;  %v1472_v45 = vadd.f32 %v2498_v55, %v1471_v56 }
0x1d8d   :  { %1721 = vmatmul.msk.f32.gmra.mxu2 %vm133_vm1, %v2298_v46  ;;  %v1442_v46 = vld [vmem:[%s2631_s11 + $0xd8] sm:$0xff] }
0x1d8e   :  { %1496 = vmatpush.msrb.mxu3 %v1442_v46  ;;  %v1474_v46 = vpop.f32.mrf.mxu0 }
0x1d95   :  { %1722 = vmatmul.msk.f32.gmra.mxu2 %vm133_vm1, %v2317_v52  ;;  %v1441_v52 = vld [vmem:[%s2631_s11 + $0xd0] sm:$0xff] }
0x1d96   :  { %1497 = vmatpush.msrb.mxu3 %v1441_v52 }
0x1d98   :  { %1498 = vmatpush.msrb.mxu3 %v1440_v13 }
0x1d9a   :  { %1499 = vmatpush.msrb.mxu3 %v1439_v14  ;;  %v1475_v14 = vadd.f32 %v2498_v55, %v1474_v46 }
0x1d9c   :  { %1500 = vmatpush.msrb.mxu3 %v1438_v15 }
0x1d9d   :  { %1723 = vmatmul.msk.f32.gmra.mxu2 %vm133_vm1, %v2333_v58  ;;  %v1437_v58 = vld [vmem:[%s2631_s11 + $0xb0] sm:$0xff] }
0x1d9e   :  { %1501 = vmatpush.msrb.mxu3 %v1437_v58 }
0x1da0   :  { %1502 = vmatpush.msrb.mxu3 %v1436_v16  ;;  %v1477_v16 = vpop.f32.mrf.mxu0 }
0x1da5   :  { %1724 = vmatmul.msk.f32.gmra.mxu2 %vm133_vm1, %v2340_v61  ;;  %v1435_v61 = vld [vmem:[%s2631_s11 + $0xa0] sm:$0xff] }
0x1da6   :  { %1503 = vmatpush.msrb.mxu3 %v1435_v61  ;;  %v1478_v61 = vadd.f32 %v2498_v55, %v1477_v16 }
0x1da8   :  { %1504 = vmatpush.msrb.mxu3 %v1434_v18 }
0x1dad   :  { %1725 = vmatmul.msk.f32.gmra.mxu2 %vm133_vm1, %v2344_v62  ;;  %v1433_v62 = vld [vmem:[%s2631_s11 + $0x90] sm:$0xff] }
0x1dae   :  { %1505 = vmatpush.msrb.mxu3 %v1433_v62 }
0x1db0   :  { %1506 = vmatpush.msrb.mxu3 %v1432_v4  ;;  %v1480_v4 = vpop.f32.mrf.mxu0 }
0x1db2   :  { %1507 = vmatpush.msrb.mxu3 %v1431_v0  ;;  %v1481_v0 = vadd.f32 %v2498_v55, %v1480_v4 }
0x1db5   :  { %1726 = vmatmul.msk.f32.gmra.mxu2 %vm133_vm1, %v1293_v60 }
0x1e00   :  { %v1233_v19 = vpop.f32.mrf.mxu2 }
0x1e01   :  { %v1236_v8 = vadd.f32 %v1233_v19, %v748_v17 }
0x1e02   :  { %v1368_v20 = vpop.f32.mrf.mxu1 }
0x1e03   :  { %1854 = vtanh.f32 %v1236_v8  ;;  %v1369_v57 = vadd.f32 %v1368_v20, %v2375_v7  ;;  %v1709_v33 = vmul.f32 -1.442695, %v1236_v8 }
0x1e05   :  { %1485 = vmatmul.f32.gmra.mxu0 %v1369_v57  ;;  %1856 = vpow2.f32 %v1709_v33 }
0x1e08   :  { %v1391_v21 = vpop.f32.mrf.mxu2 }
0x1e09   :  { %v1855_v23 = vpop.eup %1854  ;;  %v1392_v24 = vadd.f32 %v1391_v21, %v2484_v6 }
0x1e0a   :  { %1259 = vrot.lane.b32.xlu2 %v1855_v23, %s1896_s19  ;;  %v1483_v23 = vpop.f32.mrf.mxu0 }
0x1e0b   :  { %1508 = vmatmul.f32.vlgmr.msrb.gmra.mxu3 %v1392_v24  ;;  %v1857_v36 = vpop.eup %1856 }
0x1e0c   :  { %v1240_v37 = vadd.f32 1.0, %v1857_v36 }
0x1e0e   :  { %1858 = vrcp.f32 %v1240_v37  ;;  %v1252_v44 = vand.u32 2147483648, %v1240_v37  ;;  %vm1246_vm5 = vweird.f32 %v1240_v37  ;;  %v1250_v47 = vand.u32 2147483647, %v1240_v37 }
0x1e10   :  { %v1394_v12 = vpop.f32.mrf.mxu2  ;;  %v1253_v50 = vor.u32 1.1754944e-38, %v1252_v44  ;;  %vm1251_vm6 = vcmp.eq.f32.partialorder %v1250_v47, 8.507059e+37 }
0x1e11   :  { %v1395_v25 = vadd.f32 %v1394_v12, %v2484_v6 }
0x1e13   :  { %1511 = vmatmul.f32.gmra.mxu3 %v1395_v25  ;;  %v1484_v25 = vadd.f32 %v2498_v55, %v1483_v23 }
0x1e14   :  { %v1859_v39 = vpop.eup %1858 }
0x1e15   :  { %v1242_v40 = vmul.f32 %v1859_v39, %v1240_v37  ;;  %vm1247_vm4 = vweird.f32 %v1859_v39 }
0x1e16   :  { %vm1248_vm0 = vmor %vm1246_vm5, %vm1247_vm4 }
0x1e17   :  { %v1243_v41 = vsub.f32 1.0, %v1242_v40 }
0x1e18   :  { %v1397_v26 = vpop.f32.mrf.mxu2 }
0x1e19   :  { %v1398_v27 = vadd.f32 %v1397_v26, %v2484_v6  ;;  %v1244_v42 = vmul.f32 %v1859_v39, %v1243_v41 }
0x1e1b   :  { %1514 = vmatmul.f32.gmra.mxu3 %v1398_v27  ;;  %v1245_v43 = vadd.f32 %v1859_v39, %v1244_v42 }
0x1e1d   :  { %v1249_v48 = vsel %vm1248_vm0, %v1859_v39, %v1245_v43 }
0x1e1e   :  { %v1254_v38 = vsel %vm1251_vm6, %v1253_v50, %v1249_v48 }
0x1e1f   :  { %v1257_v8 = vmul.f32 %v1254_v38, %v2392_v49 }
0x1e20   :  { %v1400_v28 = vpop.f32.mrf.mxu2 }
0x1e21   :  { %v1401_v29 = vadd.f32 %v1400_v28, %v2484_v6 }
0x1e23   :  { %1517 = vmatmul.f32.gmra.mxu3 %v1401_v29 }
0x1e28   :  { %v1403_v3 = vpop.f32.mrf.mxu2 }
0x1e29   :  { %v1404_v30 = vadd.f32 %v1403_v3, %v2484_v6 }
0x1e2b   :  { %1520 = vmatmul.f32.gmra.mxu3 %v1404_v30 }
0x1e30   :  { %v1406_v31 = vpop.f32.mrf.mxu2 }
0x1e31   :  { %v1407_v32 = vadd.f32 %v1406_v31, %v2484_v6 }
0x1e33   :  { %1523 = vmatmul.f32.gmra.mxu3 %v1407_v32 }
0x1e38   :  { %v1409_v34 = vpop.f32.mrf.mxu2 }
0x1e39   :  { %v1410_v35 = vadd.f32 %v1409_v34, %v2484_v6 }
0x1e3b   :  { %1526 = vmatmul.f32.gmra.mxu3 %v1410_v35 }
0x1e64   :  { %v1260_v51 = vpop.permute.xlu2 %1259 }
0x1e65   :  { %v1262_v22 = vmul.f32 %v1260_v51, %v1254_v38 }
0x1e67   :  { %1264 = vrot.lane.b32.xlu0 %v1262_v22, %s1897_s22 }
0x1e82   :  { %v1486_v37 = vpop.f32.mrf.mxu0 }
0x1e83   :  { %v1487_v41 = vadd.f32 %v2498_v55, %v1486_v37 }
0x1e8e   :  { %v1509_v60 = vpop.f32.mrf.mxu3 }
0x1e8f   :  { %v1510_v1 = vadd.f32 %v1509_v60, %v1469_v63 }
0x1e91   :  { %v1533_v10 = vmax.f32 %v1510_v1, 0.0 }
0x1e93   :  { %v2506_v11 = vsel %vm1543_vm7, %v1533_v10, -1e+30 }
0x1e94   :  { %1552 = vmax.xlane.f32.xlu0 %v2506_v11 }
0x1e96   :  { %v1512_v52 = vpop.f32.mrf.mxu3 }
0x1e97   :  { %v1513_v13 = vadd.f32 %v1512_v52, %v1472_v45 }
0x1e99   :  { %v1534_v24 = vmax.f32 %v1513_v13, 0.0 }
0x1e9b   :  { %v2526_v28 = vsel %vm1543_vm7, %v1534_v24, -1e+30 }
0x1e9e   :  { %v1515_v15 = vpop.f32.mrf.mxu3 }
0x1e9f   :  { %v1516_v58 = vadd.f32 %v1515_v15, %v1475_v14 }
0x1ea1   :  { %v1535_v34 = vmax.f32 %v1516_v58, 0.0 }
0x1ea3   :  { %v2538_v36 = vsel %vm1543_vm7, %v1535_v34, -1e+30 }
0x1ea6   :  { %v1518_v18 = vpop.f32.mrf.mxu3 }
0x1ea7   :  { %v1519_v62 = vadd.f32 %v1518_v18, %v1478_v61 }
0x1ea9   :  { %v1536_v39 = vmax.f32 %v1519_v62, 0.0 }
0x1eab   :  { %v2546_v44 = vsel %vm1543_vm7, %v1536_v39, -1e+30 }
0x1eae   :  { %v1521_v9 = vpop.f32.mrf.mxu3 }
0x1eaf   :  { %v1522_v5 = vadd.f32 %v1521_v9, %v1481_v0 }
0x1eb1   :  { %v1537_v17 = vmax.f32 %v1522_v5, 0.0 }
0x1eb3   :  { %v2515_v19 = vsel %vm1543_vm7, %v1537_v17, -1e+30 }
0x1eb4   :  { %1560 = vmax.xlane.f32.xlu0 %v2515_v19 }
0x1eb6   :  { %v1524_v12 = vpop.f32.mrf.mxu3 }
0x1eb7   :  { %v1525_v27 = vadd.f32 %v1524_v12, %v1484_v25 }
0x1eb9   :  { %v1538_v29 = vmax.f32 %v1525_v27, 0.0 }
0x1ebb   :  { %v2532_v30 = vsel %vm1543_vm7, %v1538_v29, -1e+30 }
0x1ebe   :  { %v1527_v40 = vpop.f32.mrf.mxu3 }
0x1ebf   :  { %v1528_v42 = vadd.f32 %v1527_v40, %v1487_v41 }
0x1ec1   :  { %v1539_v48 = vmax.f32 %v1528_v42, 0.0 }
0x1ec3   :  { %v2552_v22 = vsel %vm1543_vm7, %v1539_v48, -1e+30 }
0x1ed9   :  { %v1265_v20 = vpop.permute.xlu0 %1264 }
0x1eda   :  { %v2519_v57 = vadd.f32 %v1265_v20, %v1257_v8 }
0x1edc   :  { %1860 = vtanh.f32 %v2519_v57 }
0x1ee2   :  { %v1861_v21 = vpop.eup %1860 }
0x1ee3   :  { %1270 = vrot.lane.b32.xlu1 %v1861_v21, %s1896_s19 }
0x1f07   :  { %v1553_v26 = vpop.xlane.xlu0 %1552 }
0x1f08   :  { %v1568_v49 = vsub.f32 %v2506_v11, %v1553_v26 }
0x1f0a   :  { %v1576_v3 = vmul.f32 1.442695, %v1568_v49 }
0x1f0c   :  { %1862 = vpow2.f32 %v1576_v3 }
0x1f0d   :  { %1554 = vmax.xlane.f32.xlu1 %v2526_v28 }
0x1f12   :  { %v1863_v31 = vpop.eup %1862 }
0x1f15   :  { %1562 = vmax.xlane.f32.xlu1 %v2532_v30 }
0x1f1d   :  { %1592 = vadd.xlane.f32.xlu1 %v1863_v31 }
0x1f27   :  { %v1561_v51 = vpop.xlane.xlu0 %1560 }
0x1f28   :  { %v1572_v53 = vsub.f32 %v2515_v19, %v1561_v51 }
0x1f2a   :  { %v1584_v54 = vmul.f32 1.442695, %v1572_v53 }
0x1f55   :  { %v1271_v32 = vpop.permute.xlu1 %1270 }
0x1f56   :  { %v1273_v33 = vmul.f32 %v1271_v32, %v1254_v38 }
0x1f58   :  { %1275 = vrot.lane.b32.xlu2 %v1273_v33, %s1897_s22 }
0x1f80   :  { %v1555_v35 = vpop.xlane.xlu1 %1554 }
0x1f81   :  { %1556 = vmax.xlane.f32.xlu2 %v2538_v36  ;;  %v1569_v47 = vsub.f32 %v2526_v28, %v1555_v35 }
0x1f83   :  { %v1578_v50 = vmul.f32 1.442695, %v1569_v47 }
0x1f88   :  { %v2542_v43 = vpop.xlane.xlu1 %1562 }
0x1f89   :  { %1558 = vmax.xlane.f32.xlu2 %v2546_v44  ;;  %v1573_v47 = vsub.f32 %v2532_v30, %v2542_v43 }
0x1f8b   :  { %v1586_v48 = vmul.f32 1.442695, %v1573_v47 }
0x1f90   :  { %v1593_v38 = vpop.xlane.xlu1 %1592 }
0x1f91   :  { %1864 = vlog2.f32 %v1593_v38  ;;  %1564 = vmax.xlane.f32.xlu2 %v2552_v22 }
0x1f92   :  { %1866 = vpow2.f32 %v1578_v50 }
0x1f93   :  { %1868 = vpow2.f32 %v1584_v54 }
0x1f97   :  { %v1865_v56 = vpop.eup %1864 }
0x1f98   :  { %v1867_v63 = vpop.eup %1866  ;;  %v1609_v60 = vmul.f32 0.6931472, %v1865_v56 }
0x1f99   :  { %1594 = vadd.xlane.f32.xlu2 %v1867_v63  ;;  %v1869_v45 = vpop.eup %1868 }
0x1f9a   :  { %v1624_v1 = vadd.f32 %v1609_v60, %v1553_v26 }
0x1f9c   :  { %v1632_v10 = vsub.f32 %v2506_v11, %v1624_v1 }
0x1f9e   :  { %1640 = vst [vmem:[%s2635_s13] sm:$0xff] %v1632_v10 }
0x1fa1   :  { %1600 = vadd.xlane.f32.xlu2 %v1869_v45 }
0x1fb2   :  { %v1276_v46 = vpop.permute.xlu2 %1275 }
0x1fb3   :  { %1278 = vst.msk [vmem:[#allocation2 + $0x38] sm:$0xff] %vm133_vm1, %v1276_v46 }
0x1fb4   :  { %1710 = vst.msk [vmem:[%s2634_s14 + $0x8] sm:$0xff] %vm133_vm1, %v1276_v46 }
0x1fba   :  { %v1294_v52 = vld [vmem:[#allocation2 + $0x38] sm:$0xff] }
0x1fbb   :  { %1719 = vmatmul.msk.f32.gmra.mxu1 %vm133_vm1, %v1294_v52  ;;  %1727 = vmatmul.msk.f32.gmra.mxu2 %vm133_vm1, %v1294_v52 }
0x1ff4   :  { %v2567_v11 = vpop.xlane.xlu2 %1556 }
0x1ffc   :  { %v1559_v13 = vpop.xlane.xlu2 %1558 }
0x1ffd   :  { %v1571_v14 = vsub.f32 %v2546_v44, %v1559_v13 }
0x1fff   :  { %v1582_v15 = vmul.f32 1.442695, %v1571_v14 }
0x2001   :  { %1870 = vpow2.f32 %v1582_v15 }
0x2004   :  { %v1565_v58 = vpop.xlane.xlu2 %1564 }
0x2005   :  { %v1574_v16 = vsub.f32 %v2552_v22, %v1565_v58 }
0x2007   :  { %v1871_v61 = vpop.eup %1870  ;;  %v1588_v18 = vmul.f32 1.442695, %v1574_v16 }
0x2008   :  { %1598 = vadd.xlane.f32.xlu1 %v1871_v61 }
0x2009   :  { %1872 = vpow2.f32 %v1588_v18 }
0x200c   :  { %v1595_v62 = vpop.xlane.xlu2 %1594 }
0x200d   :  { %1874 = vlog2.f32 %v1595_v62 }
0x200f   :  { %v1873_v4 = vpop.eup %1872 }
0x2010   :  { %1604 = vadd.xlane.f32.xlu1 %v1873_v4 }
0x2013   :  { %v1875_v0 = vpop.eup %1874 }
0x2014   :  { %v1611_v9 = vmul.f32 0.6931472, %v1875_v0  ;;  %v1601_v5 = vpop.xlane.xlu2 %1600 }
0x2015   :  { %1876 = vlog2.f32 %v1601_v5 }
0x2016   :  { %v1625_v17 = vadd.f32 %v1611_v9, %v1555_v35  ;;  %v1570_v35 = vsub.f32 %v2538_v36, %v2567_v11 }
0x2018   :  { %v1633_v8 = vsub.f32 %v2526_v28, %v1625_v17  ;;  %v1580_v41 = vmul.f32 1.442695, %v1570_v35 }
0x201a   :  { %1641 = vst [vmem:[%s2635_s13 + $0x8] sm:$0xff] %v1633_v8 }
0x201b   :  { %v1877_v20 = vpop.eup %1876 }
0x201c   :  { %v1617_v21 = vmul.f32 0.6931472, %v1877_v20 }
0x201e   :  { %v1628_v23 = vadd.f32 %v1617_v21, %v1561_v51 }
0x2020   :  { %v1636_v24 = vsub.f32 %v2515_v19, %v1628_v23 }
0x2022   :  { %1644 = vst [vmem:[%s2635_s13 + $0x20] sm:$0xff] %v1636_v24 }
0x2029   :  { %1282 = vrot.lane.b32.xlu1 %v2519_v57, %s1898_s25 }
0x2038   :  { %v1371_v12 = vpop.f32.mrf.mxu1 }
0x2039   :  { %v1372_v25 = vadd.f32 %v1371_v12, %v2375_v7 }
0x203b   :  { %1488 = vmatmul.f32.gmra.mxu0 %v1372_v25 }
0x203e   :  { %v1412_v26 = vpop.f32.mrf.mxu2 }
0x203f   :  { %v1413_v27 = vadd.f32 %v1412_v26, %v2484_v6 }
0x2041   :  { %1529 = vmatmul.f32.gmra.mxu3 %v1413_v27 }
0x207b   :  { %v1599_v28 = vpop.xlane.xlu1 %1598 }
0x207c   :  { %1878 = vlog2.f32 %v1599_v28 }
0x2082   :  { %v1879_v49 = vpop.eup %1878 }
0x2083   :  { %v1615_v19 = vmul.f32 0.6931472, %v1879_v49  ;;  %v1605_v29 = vpop.xlane.xlu1 %1604 }
0x2084   :  { %1880 = vlog2.f32 %v1605_v29 }
0x2085   :  { %v1627_v3 = vadd.f32 %v1615_v19, %v1559_v13  ;;  %1882 = vpow2.f32 %v1580_v41 }
0x2086   :  { %1884 = vpow2.f32 %v1586_v48 }
0x2087   :  { %v1635_v31 = vsub.f32 %v2546_v44, %v1627_v3 }
0x2089   :  { %1643 = vst [vmem:[%s2635_s13 + $0x18] sm:$0xff] %v1635_v31 }
0x208a   :  { %v1881_v57 = vpop.eup %1880 }
0x208b   :  { %v1621_v7 = vmul.f32 0.6931472, %v1881_v57  ;;  %v1883_v50 = vpop.eup %1882 }
0x208c   :  { %v1885_v51 = vpop.eup %1884 }
0x208d   :  { %v1630_v32 = vadd.f32 %v1621_v7, %v1565_v58 }
0x208f   :  { %v1638_v33 = vsub.f32 %v2552_v22, %v1630_v32 }
0x2091   :  { %1646 = vst [vmem:[%s2635_s13 + $0x30] sm:$0xff] %v1638_v33 }
0x209b   :  { %v1283_v6 = vpop.permute.xlu1 %1282 }
0x209c   :  { %1711 = vst.msk [vmem:[%s2636_s15 + $0x8] sm:$0xff] %vm133_vm1, %v1283_v6 }
0x20b8   :  { %v1489_v34 = vpop.f32.mrf.mxu0 }
0x20b9   :  { %v1490_v37 = vadd.f32 %v2498_v55, %v1489_v34 }
0x20c4   :  { %v1530_v39 = vpop.f32.mrf.mxu3 }
0x20c5   :  { %v1531_v40 = vadd.f32 %v1530_v39, %v1490_v37 }
0x20c7   :  { %v1540_v42 = vmax.f32 %v1531_v40, 0.0 }
0x20c9   :  { %v1551_v44 = vsel %vm1543_vm7, %v1540_v42, -1e+30 }
0x20ca   :  { %1566 = vmax.xlane.f32.xlu0 %v1551_v44 }
0x20d2   :  { %1596 = vadd.xlane.f32.xlu0 %v1883_v50 }
0x20da   :  { %1602 = vadd.xlane.f32.xlu0 %v1885_v51 }
0x20ee   :  { %661 = vrot.lane.b32.xlu0 %v2377_v2, %s1898_s25 }
0x213d   :  { %v1567_v55 = vpop.xlane.xlu0 %1566 }
0x213e   :  { %v1575_v38 = vsub.f32 %v1551_v44, %v1567_v55 }
0x2140   :  { %v1590_v22 = vmul.f32 1.442695, %v1575_v38 }
0x2142   :  { %1886 = vpow2.f32 %v1590_v22 }
0x2145   :  { %v1597_v59 = vpop.xlane.xlu0 %1596 }
0x2146   :  { %1888 = vlog2.f32 %v1597_v59 }
0x2148   :  { %v1887_v53 = vpop.eup %1886 }
0x2149   :  { %1606 = vadd.xlane.f32.xlu2 %v1887_v53 }
0x214c   :  { %v1889_v54 = vpop.eup %1888 }
0x214d   :  { %v1613_v56 = vmul.f32 0.6931472, %v1889_v54  ;;  %v1603_v63 = vpop.xlane.xlu0 %1602 }
0x214e   :  { %1890 = vlog2.f32 %v1603_v63 }
0x214f   :  { %v1626_v60 = vadd.f32 %v1613_v56, %v2567_v11 }
0x2151   :  { %v1634_v1 = vsub.f32 %v2538_v36, %v1626_v60 }
0x2153   :  { %1642 = vst [vmem:[%s2635_s13 + $0x10] sm:$0xff] %v1634_v1 }
0x2154   :  { %v1891_v2 = vpop.eup %1890 }
0x2155   :  { %v1619_v10 = vmul.f32 0.6931472, %v1891_v2 }
0x2157   :  { %v1629_v45 = vadd.f32 %v1619_v10, %v2542_v43 }
0x2159   :  { %v1637_v46 = vsub.f32 %v2532_v30, %v1629_v45 }
0x215b   :  { %1645 = vst [vmem:[%s2635_s13 + $0x28] sm:$0xff] %v1637_v46 }
0x2160   :  { %v662_v52 = vpop.permute.xlu0 %661 }
0x2161   :  { %664 = vst.msk [vmem:[%s2636_s15] sm:$0xff] %vm133_vm1, %v662_v52 }
0x21bc   :  { %v1607_v36 = vpop.xlane.xlu2 %1606 }
0x21bd   :  { %1892 = vlog2.f32 %v1607_v36 }
0x21c3   :  { %v1893_v11 = vpop.eup %1892 }
0x21c4   :  { %v1623_v13 = vmul.f32 0.6931472, %v1893_v11 }
0x21c6   :  { %v1631_v14 = vadd.f32 %v1623_v13, %v1567_v55 }
0x21c8   :  { %v1639_v15 = vsub.f32 %v1551_v44, %v1631_v14 }
0x21ca   :  { %1647 = vst [vmem:[%s2635_s13 + $0x38] sm:$0xff] %v1639_v15 }

</bundles_post_ra>
